<compile_context>
chip_gen: v7x
topology: tpu7x:2x2x1
jax: 0.10.0
libtpu: 0.0.40
codegen_flags: <defaults>
</compile_context>

<pallas_src>
import functools
from typing import NamedTuple

import jax
import jax.numpy as jnp
from jax.experimental import pallas as pl
from jax.experimental.pallas import tpu as pltpu

LIB_FACTOR = 1.0e6
BN_EPS = 1e-5
LEAKY_SLOPE = 0.2
N_OUT_FIELDS = 7  # mean_nodes, r_nodes, pi_nodes, mean, r, pi, normal_mean_nodes

# bf16 operands on the MXU (f32 accumulation is kept via preferred_element_type).
# Set to None for bit-closer f32 matmuls.
MATMUL_DTYPE = jnp.bfloat16


class KernelConfig(NamedTuple):
    genes: int              # real number of genes G
    genes_padded: int       # G padded to a multiple of tile_genes (multiple of 128)
    tile_genes: int         # lane tile width along the gene axis
    batch_multiple: int     # sublane multiple for batch padding (8 f32 / 16 bf16)
    vmem_limit_bytes: int   # per-generation scoped VMEM limit


# --------------------------------------------------------------------------
# small helpers
# --------------------------------------------------------------------------

def _round_up(x, m):
    return pl.cdiv(x, m) * m


def _cast(a):
    return a.astype(MATMUL_DTYPE) if MATMUL_DTYPE is not None else a


def _mm(a, b):
    # b (weights) is already stored in MATMUL_DTYPE; cast the activation side.
    return jnp.dot(_cast(a), b, preferred_element_type=jnp.float32)


def _l2norm(e):
    # F.normalize(p=2, dim=-1, eps=1e-12): divide by max(norm, eps)
    n = jnp.sqrt(jnp.sum(e * e, axis=-1, keepdims=True))
    return e / jnp.maximum(n, 1e-12)


def _full_spec(shape):
    nd = len(shape)
    return pl.BlockSpec(shape, lambda *_: (0,) * nd)


def _pad2(a, rows, cols):
    pr, pc = rows - a.shape[0], cols - a.shape[1]
    if pr or pc:
        a = jnp.pad(a, ((0, pr), (0, pc)))
    return a


def _hardware_budget():
    """Per-generation lane-tile width and scoped-VMEM limit (with headroom)."""
    cap = None
    try:
        cap = getattr(pltpu.get_tpu_info(), "vmem_capacity_bytes", None)
    except Exception:
        cap = None
    if not cap:
        cap = 64 << 20                       # conservative: assume v7x (64 MiB)
    vmem_limit = int((cap * 3) // 4)         # 48 MiB on v7x, 96 MiB on v5e/v6e
    lane_tile = 2048 if cap >= (96 << 20) else 1024
    return vmem_limit, lane_tile


# --------------------------------------------------------------------------
# Stage 1: preprocess + encoder/decoder NeuronPools (gene axis = K reduction)
# --------------------------------------------------------------------------

def encode_kernel(num_layers, batch_real, *refs):
    """Preprocess + layer-1 matmul accumulated over gene tiles; epilogue runs
    BatchNorm/LeakyReLU/PointwiseLinear and the remaining (small) layers."""
    x_ref, w_in_ref, b_in_ref, ls_scale_ref = refs[0:4]
    layer_refs = refs[4:4 + 5 * num_layers]
    sig_ref = refs[4 + 5 * num_layers]
    acc_ref = refs[5 + 5 * num_layers]

    k = pl.program_id(0)

    @pl.when(k == 0)
    def _():
        acc_ref[...] = jnp.zeros_like(acc_ref)

    # dropout(identity) -> library-size normalize -> log-scale -> pointwise.
    # TODO(synk): training-mode dropout mask treated as inference identity.
    x = x_ref[...]                                            # (B_pad, tG)
    sig_tile = (jnp.log(x * ls_scale_ref[...] + 1.0) * w_in_ref[...]
                + b_in_ref[...])
    acc_ref[...] += _mm(sig_tile, layer_refs[0][...])         # partial (B, N1)

    @pl.when(k == pl.num_programs(0) - 1)
    def _():
        b_pad = acc_ref.shape[0]
        # mask padded batch rows out of the BatchNorm batch statistics
        row_mask = (jax.lax.broadcasted_iota(jnp.int32, (b_pad, 1), 0)
                    < batch_real).astype(jnp.float32)
        inv_b = 1.0 / float(batch_real)

        def post(s, bng, bnb, pww, pwb):
            # BatchNorm (training-mode batch stats), folded into one FMA.
            mu = jnp.sum(s * row_mask, axis=0, keepdims=True) * inv_b
            var = jnp.sum((s * s) * row_mask, axis=0, keepdims=True) * inv_b - mu * mu
            a = jax.lax.rsqrt(jnp.maximum(var, 0.0) + BN_EPS) * bng
            c = bnb - mu * a
            h = s * a + c
            h = jnp.maximum(h, LEAKY_SLOPE * h)               # LeakyReLU(0.2)
            return h * pww + pwb                              # PointwiseLinear

        signal = post(acc_ref[...], layer_refs[1][...], layer_refs[2][...],
                      layer_refs[3][...], layer_refs[4][...])
        for l in range(1, num_layers):
            W_ref, bng_ref, bnb_ref, pww_ref, pwb_ref = layer_refs[5 * l:5 * l + 5]
            s = _mm(signal, W_ref[...])                       # attention aggregation
            signal = post(s, bng_ref[...], bnb_ref[...], pww_ref[...], pwb_ref[...])
        sig_ref[...] = signal                                 # (B_pad, N_last)


# --------------------------------------------------------------------------
# Stage 2: three output heads + finalize (gene axis = parallel lane tiles)
# --------------------------------------------------------------------------

def decode_kernel(sig_ref, log_ls_ref, ls_ratio_ref,
                  w_m_ref, pww_m_ref, pwb_m_ref,
                  w_r_ref, pww_r_ref, pwb_r_ref,
                  w_p_ref, pww_p_ref, pwb_p_ref,
                  out_ref):
    sig = sig_ref[...]                                        # (B_pad, N_last) f32

    mean_n = _mm(sig, w_m_ref[...]) * pww_m_ref[...] + pwb_m_ref[...]
    r_n = _mm(sig, w_r_ref[...]) * pww_r_ref[...] + pwb_r_ref[...]
    pi_n = _mm(sig, w_p_ref[...]) * pww_p_ref[...] + pwb_p_ref[...]

    log_ls = log_ls_ref[...]                                  # (B_pad, 1)
    ls_ratio = ls_ratio_ref[...]                              # (B_pad, 1)

    e_mean = jnp.exp(mean_n)                                  # shared exp
    denorm = log_ls + mean_n                                  # denormalized mean_nodes
    mean = ls_ratio * e_mean                                  # == exp(denorm)
    r = jnp.exp(r_n)
    pi = 1.0 / (1.0 + jnp.exp(-pi_n))                         # exact sigmoid

    # lane-dense (B_pad, tG) stores, one per field
    out_ref[0] = denorm                                       # mean_nodes
    out_ref[1] = r_n                                          # r_nodes
    out_ref[2] = pi_n                                         # pi_nodes
    out_ref[3] = mean                                         # mean / pred
    out_ref[4] = r                                            # r
    out_ref[5] = pi                                           # pi
    out_ref[6] = e_mean                                       # normal_mean_nodes
    # TODO(synk): at scale, emit the exp/sigmoid fields in bf16 (or reconstruct
    #             them downstream) to halve the HBM writeback of this stage.


# --------------------------------------------------------------------------
# Parameter-only precompute (one-time setup, outside the per-batch kernels)
# --------------------------------------------------------------------------

def prepare_model(params):
    """Precompute attention matrices, pad weights to the gene tiling, pick
    per-generation tile/VMEM config."""
    G = params["gene_emb_in"].shape[0]
    vmem_limit, lane_tile = _hardware_budget()
    tile = min(lane_tile, _round_up(G, 128))
    g_pad = _round_up(G, tile)
    cfg = KernelConfig(genes=G, genes_padded=g_pad, tile_genes=tile,
                       batch_multiple=8 if MATMUL_DTYPE is None else 16,
                       vmem_limit_bytes=vmem_limit)

    pad_g = g_pad - G

    def pad_cols(a):          # (r, G) -> (r, g_pad)
        return jnp.pad(a, ((0, 0), (0, pad_g))) if pad_g else a

    def pad_rows(a):          # (G, c) -> (g_pad, c)
        return jnp.pad(a, ((0, pad_g), (0, 0))) if pad_g else a

    axon_n = _l2norm(params["gene_emb_in"])                   # input pool axons
    layers = []
    for li, lp in enumerate(params["encoder"] + params["decoder"]):
        dend_n = _l2norm(lp["emb"])
        W = jnp.dot(axon_n, dend_n.T, preferred_element_type=jnp.float32)
        if li == 0:
            W = pad_rows(W)   # padded gene rows meet zero signal anyway
        layers.append({"W": _cast(W),
                       "bn_g": lp["bn_g"], "bn_b": lp["bn_b"],
                       "pw_w": lp["pw_w"], "pw_b": lp["pw_b"]})
        axon_n = dend_n                                       # axon_dendrite_linked

    heads = []
    for hp in (params["out_mean"], params["out_r"], params["out_pi"]):
        Wh = jnp.dot(axon_n, _l2norm(hp["emb"]).T, preferred_element_type=jnp.float32)
        heads.append({"W": _cast(pad_cols(Wh)),
                      "pw_w": pad_cols(hp["pw_w"]),
                      "pw_b": pad_cols(hp["pw_b"])})

    prepared = {"w_in": pad_cols(params["w_in"]),
                "b_in": pad_cols(params["b_in"]),
                "layers": layers, "heads": heads}
    return prepared, cfg


# --------------------------------------------------------------------------
# Forward (two gridded pallas_calls)
# --------------------------------------------------------------------------

@functools.partial(jax.jit, static_argnames=("cfg",))
def fnn_autoencoder_forward(prepared, x, *, cfg):
    B, G = x.shape
    if G != cfg.genes:
        raise ValueError("gene dimension mismatch")
    g_pad, tile = cfg.genes_padded, cfg.tile_genes
    n_tiles = g_pad // tile
    # Pad the batch to a sublane multiple; BN stats are masked to the real rows.
    # TODO(synk): at realistic scale pad/tile the batch to >=128/256 rows for
    #             full MXU M utilization (pure waste at these toy sizes).
    b_pad = _round_up(B, cfg.batch_multiple)

    x = x.astype(jnp.float32)
    # Library sizes over the full (unpadded) gene axis, precomputed once so the
    # tiled preprocess never needs a second full read of x.
    ls = jnp.sum(x, axis=1, keepdims=True)
    ls = jnp.where(ls > 0.0, ls, 1.0)                         # guard all-zero rows
    ls_scale = _pad2(LIB_FACTOR / ls, b_pad, 1)
    log_ls = _pad2(jnp.log(ls / LIB_FACTOR), b_pad, 1)
    ls_ratio = _pad2(ls / LIB_FACTOR, b_pad, 1)
    x_p = _pad2(x, b_pad, g_pad)

    layers = prepared["layers"]
    num_layers = len(layers)
    n1 = layers[0]["W"].shape[1]
    n_last = layers[-1]["W"].shape[1]

    # ---- stage 1: encode (gene axis = K accumulation, "arbitrary")
    enc_inputs = [x_p, prepared["w_in"], prepared["b_in"], ls_scale]
    enc_specs = [
        pl.BlockSpec((b_pad, tile), lambda k: (0, k)),
        pl.BlockSpec((1, tile), lambda k: (0, k)),
        pl.BlockSpec((1, tile), lambda k: (0, k)),
        _full_spec((b_pad, 1)),
    ]
    for li, lp in enumerate(layers):
        enc_inputs += [lp["W"], lp["bn_g"], lp["bn_b"], lp["pw_w"], lp["pw_b"]]
        if li == 0:
            enc_specs.append(pl.BlockSpec((tile, n1), lambda k: (k, 0)))
        else:
            enc_specs.append(_full_spec(lp["W"].shape))
        enc_specs += [_full_spec(lp[name].shape)
                      for name in ("bn_g", "bn_b", "pw_w", "pw_b")]

    signal_last = pl.pallas_call(
        functools.partial(encode_kernel, num_layers, B),
        out_shape=jax.ShapeDtypeStruct((b_pad, n_last), jnp.float32),
        grid=(n_tiles,),
        in_specs=enc_specs,
        out_specs=pl.BlockSpec((b_pad, n_last), lambda k: (0, 0)),
        scratch_shapes=[pltpu.VMEM((b_pad, n1), jnp.float32)],
        compiler_params=pltpu.CompilerParams(
            dimension_semantics=("arbitrary",),
            vmem_limit_bytes=cfg.vmem_limit_bytes),
    )(*enc_inputs)

    # ---- stage 2: heads + finalize (gene axis = "parallel" lane tiles)
    dec_inputs = [signal_last, log_ls, ls_ratio]
    dec_specs = [_full_spec((b_pad, n_last)),
                 _full_spec((b_pad, 1)), _full_spec((b_pad, 1))]
    for hp in prepared["heads"]:
        dec_inputs += [hp["W"], hp["pw_w"], hp["pw_b"]]
        dec_specs += [
            pl.BlockSpec((n_last, tile), lambda j: (0, j)),
            pl.BlockSpec((1, tile), lambda j: (0, j)),
            pl.BlockSpec((1, tile), lambda j: (0, j)),
        ]

    out = pl.pallas_call(
        decode_kernel,
        out_shape=jax.ShapeDtypeStruct((N_OUT_FIELDS, b_pad, g_pad), jnp.float32),
        grid=(n_tiles,),
        in_specs=dec_specs,
        out_specs=pl.BlockSpec((N_OUT_FIELDS, b_pad, tile), lambda j: (0, 0, j)),
        compiler_params=pltpu.CompilerParams(
            dimension_semantics=("parallel",),
            vmem_limit_bytes=cfg.vmem_limit_bytes),
    )(*dec_inputs)

    names = ("mean_nodes", "r_nodes", "pi_nodes", "mean", "r", "pi",
             "normal_mean_nodes")
    result = {n: out[i, :B, :G] for i, n in enumerate(names)}
    result["pred"] = result["mean"]
    return result


# --------------------------------------------------------------------------
# Parameter init (same layout/semantics as before)
# --------------------------------------------------------------------------

def init_params(key, input_dim, gene_embedding_dim, encoder_sizes, decoder_sizes):
    ks = iter(jax.random.split(key, 64))
    p = {}
    d = gene_embedding_dim
    p["gene_emb_in"] = 0.1 * jax.random.normal(next(ks), (input_dim, d), jnp.float32)
    p["w_in"] = 1.0 + 0.05 * jax.random.normal(next(ks), (1, input_dim), jnp.float32)
    p["b_in"] = 0.05 * jax.random.normal(next(ks), (1, input_dim), jnp.float32)

    def layer(n):
        return {
            "emb": 0.1 * jax.random.normal(next(ks), (n, d), jnp.float32),
            "bn_g": jnp.ones((1, n), jnp.float32),
            "bn_b": jnp.zeros((1, n), jnp.float32),
            "pw_w": 1.0 + 0.05 * jax.random.normal(next(ks), (1, n), jnp.float32),
            "pw_b": 0.05 * jax.random.normal(next(ks), (1, n), jnp.float32),
        }

    p["encoder"] = [layer(n) for n in encoder_sizes]
    p["decoder"] = [layer(n) for n in decoder_sizes]

    def head():
        return {
            "emb": 0.1 * jax.random.normal(next(ks), (input_dim, d), jnp.float32),
            "pw_w": 1.0 + 0.05 * jax.random.normal(next(ks), (1, input_dim), jnp.float32),
            "pw_b": 0.05 * jax.random.normal(next(ks), (1, input_dim), jnp.float32),
        }

    p["out_mean"] = head()
    p["out_r"] = head()
    p["out_pi"] = head()
    return p


if __name__ == "__main__":
    batch = 8
    input_dim = 32            # number of genes / input_keys
    gene_embedding_dim = 16
    encoder_sizes = [24, 16]
    decoder_sizes = [16, 24]

    key = jax.random.PRNGKey(0)
    k_param, k_data = jax.random.split(key)
    params = init_params(k_param, input_dim, gene_embedding_dim,
                         encoder_sizes, decoder_sizes)

    # one-time, parameter-only setup (attention matrices, padding, tile config)
    prepared, cfg = prepare_model(params)
    jax.block_until_ready(prepared)

    # count-like non-negative input X (B, G); keys assumed to be the full
    # input_keys list in order (identity gene selection).
    x = jax.random.uniform(k_data, (batch, input_dim), jnp.float32,
                           minval=0.0, maxval=5.0)

    out = fnn_autoencoder_forward(prepared, x, cfg=cfg)
    jax.block_until_ready(out)

    assert out["mean"].shape == (batch, input_dim)
    assert out["r"].shape == (batch, input_dim)
    assert out["pi"].shape == (batch, input_dim)
    assert out["pred"].shape == (batch, input_dim)
    assert bool(jnp.all(jnp.isfinite(out["mean"])))
    assert bool(jnp.all(jnp.isfinite(out["r"])))
    assert bool(jnp.all(jnp.isfinite(out["mean_nodes"])))
    assert bool(jnp.all((out["pi"] >= 0.0) & (out["pi"] <= 1.0)))
    print("KERNEL_OK")
</pallas_src>

<mosaic_0001>
module attributes {stable_mosaic.version = 11 : i64} {
  func.func @decode_kernel(%arg0: i32, %arg1: memref<16x24xf32, #tpu.memory_space<vmem>>, %arg2: memref<16x1xf32, #tpu.memory_space<vmem>>, %arg3: memref<16x1xf32, #tpu.memory_space<vmem>>, %arg4: memref<24x128xbf16, #tpu.memory_space<vmem>>, %arg5: memref<1x128xf32, #tpu.memory_space<vmem>>, %arg6: memref<1x128xf32, #tpu.memory_space<vmem>>, %arg7: memref<24x128xbf16, #tpu.memory_space<vmem>>, %arg8: memref<1x128xf32, #tpu.memory_space<vmem>>, %arg9: memref<1x128xf32, #tpu.memory_space<vmem>>, %arg10: memref<24x128xbf16, #tpu.memory_space<vmem>>, %arg11: memref<1x128xf32, #tpu.memory_space<vmem>>, %arg12: memref<1x128xf32, #tpu.memory_space<vmem>>, %arg13: memref<7x16x128xf32, #tpu.memory_space<vmem>>) attributes {dimension_semantics = [#tpu.dimension_semantics<parallel>], iteration_bounds = array<i64: 1>, scalar_prefetch = 0 : i64, scratch_operands = 0 : i64, tpu.core_type = #tpu.core_type<tc>, window_params = [{pipeline_mode = #tpu.pipeline_mode<synchronous>, transform_indices = @transform_0, window_bounds = array<i64: 16, 24>}, {pipeline_mode = #tpu.pipeline_mode<synchronous>, transform_indices = @transform_1, window_bounds = array<i64: 16, 1>}, {pipeline_mode = #tpu.pipeline_mode<synchronous>, transform_indices = @transform_2, window_bounds = array<i64: 16, 1>}, {transform_indices = @transform_3, window_bounds = array<i64: 24, 128>}, {transform_indices = @transform_4, window_bounds = array<i64: 1, 128>}, {transform_indices = @transform_5, window_bounds = array<i64: 1, 128>}, {transform_indices = @transform_6, window_bounds = array<i64: 24, 128>}, {transform_indices = @transform_7, window_bounds = array<i64: 1, 128>}, {transform_indices = @transform_8, window_bounds = array<i64: 1, 128>}, {transform_indices = @transform_9, window_bounds = array<i64: 24, 128>}, {transform_indices = @transform_10, window_bounds = array<i64: 1, 128>}, {transform_indices = @transform_11, window_bounds = array<i64: 1, 128>}, {transform_indices = @transform_12, window_bounds = array<i64: 7, 16, 128>}]} {
    %c0 = arith.constant 0 : index
    %c0_0 = arith.constant 0 : index
    %0 = vector.load %arg1[%c0, %c0_0] : memref<16x24xf32, #tpu.memory_space<vmem>>, vector<16x24xf32>
    %c0_1 = arith.constant 0 : index
    %c0_2 = arith.constant 0 : index
    %1 = vector.load %arg4[%c0_1, %c0_2] : memref<24x128xbf16, #tpu.memory_space<vmem>>, vector<24x128xbf16>
    %2 = arith.truncf %0 : vector<16x24xf32> to vector<16x24xbf16>
    %cst = arith.constant dense<0.000000e+00> : vector<16x128xf32>
    %3 = tpu.matmul %2, %1, %cst {dimension_numbers = #tpu.dot_dimension_numbers<[1], [0], [0], [1], [0, 0, 1, 1], [], []>} : vector<16x24xbf16>, vector<24x128xbf16>, vector<16x128xf32> -> vector<16x128xf32>
    %c0_3 = arith.constant 0 : index
    %c0_4 = arith.constant 0 : index
    %4 = vector.load %arg5[%c0_3, %c0_4] : memref<1x128xf32, #tpu.memory_space<vmem>>, vector<1x128xf32>
    %5 = vector.broadcast %4 : vector<1x128xf32> to vector<16x128xf32>
    %6 = arith.mulf %3, %5 : vector<16x128xf32>
    %c0_5 = arith.constant 0 : index
    %c0_6 = arith.constant 0 : index
    %7 = vector.load %arg6[%c0_5, %c0_6] : memref<1x128xf32, #tpu.memory_space<vmem>>, vector<1x128xf32>
    %8 = vector.broadcast %7 : vector<1x128xf32> to vector<16x128xf32>
    %9 = arith.addf %6, %8 : vector<16x128xf32>
    %c0_7 = arith.constant 0 : index
    %c0_8 = arith.constant 0 : index
    %10 = vector.load %arg7[%c0_7, %c0_8] : memref<24x128xbf16, #tpu.memory_space<vmem>>, vector<24x128xbf16>
    %11 = arith.truncf %0 : vector<16x24xf32> to vector<16x24xbf16>
    %cst_9 = arith.constant dense<0.000000e+00> : vector<16x128xf32>
    %12 = tpu.matmul %11, %10, %cst_9 {dimension_numbers = #tpu.dot_dimension_numbers<[1], [0], [0], [1], [0, 0, 1, 1], [], []>} : vector<16x24xbf16>, vector<24x128xbf16>, vector<16x128xf32> -> vector<16x128xf32>
    %c0_10 = arith.constant 0 : index
    %c0_11 = arith.constant 0 : index
    %13 = vector.load %arg8[%c0_10, %c0_11] : memref<1x128xf32, #tpu.memory_space<vmem>>, vector<1x128xf32>
    %14 = vector.broadcast %13 : vector<1x128xf32> to vector<16x128xf32>
    %15 = arith.mulf %12, %14 : vector<16x128xf32>
    %c0_12 = arith.constant 0 : index
    %c0_13 = arith.constant 0 : index
    %16 = vector.load %arg9[%c0_12, %c0_13] : memref<1x128xf32, #tpu.memory_space<vmem>>, vector<1x128xf32>
    %17 = vector.broadcast %16 : vector<1x128xf32> to vector<16x128xf32>
    %18 = arith.addf %15, %17 : vector<16x128xf32>
    %c0_14 = arith.constant 0 : index
    %c0_15 = arith.constant 0 : index
    %19 = vector.load %arg10[%c0_14, %c0_15] : memref<24x128xbf16, #tpu.memory_space<vmem>>, vector<24x128xbf16>
    %20 = arith.truncf %0 : vector<16x24xf32> to vector<16x24xbf16>
    %cst_16 = arith.constant dense<0.000000e+00> : vector<16x128xf32>
    %21 = tpu.matmul %20, %19, %cst_16 {dimension_numbers = #tpu.dot_dimension_numbers<[1], [0], [0], [1], [0, 0, 1, 1], [], []>} : vector<16x24xbf16>, vector<24x128xbf16>, vector<16x128xf32> -> vector<16x128xf32>
    %c0_17 = arith.constant 0 : index
    %c0_18 = arith.constant 0 : index
    %22 = vector.load %arg11[%c0_17, %c0_18] : memref<1x128xf32, #tpu.memory_space<vmem>>, vector<1x128xf32>
    %23 = vector.broadcast %22 : vector<1x128xf32> to vector<16x128xf32>
    %24 = arith.mulf %21, %23 : vector<16x128xf32>
    %c0_19 = arith.constant 0 : index
    %c0_20 = arith.constant 0 : index
    %25 = vector.load %arg12[%c0_19, %c0_20] : memref<1x128xf32, #tpu.memory_space<vmem>>, vector<1x128xf32>
    %26 = vector.broadcast %25 : vector<1x128xf32> to vector<16x128xf32>
    %27 = arith.addf %24, %26 : vector<16x128xf32>
    %c0_21 = arith.constant 0 : index
    %c0_22 = arith.constant 0 : index
    %28 = vector.load %arg2[%c0_21, %c0_22] : memref<16x1xf32, #tpu.memory_space<vmem>>, vector<16x1xf32>
    %c0_23 = arith.constant 0 : index
    %c0_24 = arith.constant 0 : index
    %29 = vector.load %arg3[%c0_23, %c0_24] : memref<16x1xf32, #tpu.memory_space<vmem>>, vector<16x1xf32>
    %30 = math.exp %9 : vector<16x128xf32>
    %31 = vector.broadcast %28 : vector<16x1xf32> to vector<16x128xf32>
    %32 = arith.addf %31, %9 : vector<16x128xf32>
    %33 = vector.broadcast %29 : vector<16x1xf32> to vector<16x128xf32>
    %34 = arith.mulf %33, %30 : vector<16x128xf32>
    %35 = math.exp %18 : vector<16x128xf32>
    %cst_25 = arith.constant 0.000000e+00 : f32
    %36 = vector.broadcast %cst_25 : f32 to vector<16x128xf32>
    %37 = arith.subf %36, %27 : vector<16x128xf32>
    %38 = math.exp %37 : vector<16x128xf32>
    %cst_26 = arith.constant 1.000000e+00 : f32
    %39 = vector.broadcast %cst_26 : f32 to vector<16x128xf32>
    %40 = arith.addf %39, %38 : vector<16x128xf32>
    %cst_27 = arith.constant 1.000000e+00 : f32
    %41 = vector.broadcast %cst_27 : f32 to vector<16x128xf32>
    %42 = arith.divf %41, %40 : vector<16x128xf32>
    %c0_28 = arith.constant 0 : index
    %c0_29 = arith.constant 0 : index
    %c0_30 = arith.constant 0 : index
    %43 = vector.load %arg13[%c0_28, %c0_29, %c0_30] : memref<7x16x128xf32, #tpu.memory_space<vmem>>, vector<1x16x128xf32>
    %44 = vector.shape_cast %43 : vector<1x16x128xf32> to vector<16x128xf32>
    %45 = vector.shape_cast %32 : vector<16x128xf32> to vector<1x16x128xf32>
    tpu.vector_store %arg13[%c0_28, %c0_29, %c0_30], %45 {strides = array<i32>} : memref<7x16x128xf32, #tpu.memory_space<vmem>>, vector<1x16x128xf32>,
    %c1 = arith.constant 1 : index
    %c0_31 = arith.constant 0 : index
    %c0_32 = arith.constant 0 : index
    %46 = vector.load %arg13[%c1, %c0_31, %c0_32] : memref<7x16x128xf32, #tpu.memory_space<vmem>>, vector<1x16x128xf32>
    %47 = vector.shape_cast %46 : vector<1x16x128xf32> to vector<16x128xf32>
    %48 = vector.shape_cast %18 : vector<16x128xf32> to vector<1x16x128xf32>
    tpu.vector_store %arg13[%c1, %c0_31, %c0_32], %48 {strides = array<i32>} : memref<7x16x128xf32, #tpu.memory_space<vmem>>, vector<1x16x128xf32>,
    %c2 = arith.constant 2 : index
    %c0_33 = arith.constant 0 : index
    %c0_34 = arith.constant 0 : index
    %49 = vector.load %arg13[%c2, %c0_33, %c0_34] : memref<7x16x128xf32, #tpu.memory_space<vmem>>, vector<1x16x128xf32>
    %50 = vector.shape_cast %49 : vector<1x16x128xf32> to vector<16x128xf32>
    %51 = vector.shape_cast %27 : vector<16x128xf32> to vector<1x16x128xf32>
    tpu.vector_store %arg13[%c2, %c0_33, %c0_34], %51 {strides = array<i32>} : memref<7x16x128xf32, #tpu.memory_space<vmem>>, vector<1x16x128xf32>,
    %c3 = arith.constant 3 : index
    %c0_35 = arith.constant 0 : index
    %c0_36 = arith.constant 0 : index
    %52 = vector.load %arg13[%c3, %c0_35, %c0_36] : memref<7x16x128xf32, #tpu.memory_space<vmem>>, vector<1x16x128xf32>
    %53 = vector.shape_cast %52 : vector<1x16x128xf32> to vector<16x128xf32>
    %54 = vector.shape_cast %34 : vector<16x128xf32> to vector<1x16x128xf32>
    tpu.vector_store %arg13[%c3, %c0_35, %c0_36], %54 {strides = array<i32>} : memref<7x16x128xf32, #tpu.memory_space<vmem>>, vector<1x16x128xf32>,
    %c4 = arith.constant 4 : index
    %c0_37 = arith.constant 0 : index
    %c0_38 = arith.constant 0 : index
    %55 = vector.load %arg13[%c4, %c0_37, %c0_38] : memref<7x16x128xf32, #tpu.memory_space<vmem>>, vector<1x16x128xf32>
    %56 = vector.shape_cast %55 : vector<1x16x128xf32> to vector<16x128xf32>
    %57 = vector.shape_cast %35 : vector<16x128xf32> to vector<1x16x128xf32>
    tpu.vector_store %arg13[%c4, %c0_37, %c0_38], %57 {strides = array<i32>} : memref<7x16x128xf32, #tpu.memory_space<vmem>>, vector<1x16x128xf32>,
    %c5 = arith.constant 5 : index
    %c0_39 = arith.constant 0 : index
    %c0_40 = arith.constant 0 : index
    %58 = vector.load %arg13[%c5, %c0_39, %c0_40] : memref<7x16x128xf32, #tpu.memory_space<vmem>>, vector<1x16x128xf32>
    %59 = vector.shape_cast %58 : vector<1x16x128xf32> to vector<16x128xf32>
    %60 = vector.shape_cast %42 : vector<16x128xf32> to vector<1x16x128xf32>
    tpu.vector_store %arg13[%c5, %c0_39, %c0_40], %60 {strides = array<i32>} : memref<7x16x128xf32, #tpu.memory_space<vmem>>, vector<1x16x128xf32>,
    %c6 = arith.constant 6 : index
    %c0_41 = arith.constant 0 : index
    %c0_42 = arith.constant 0 : index
    %61 = vector.load %arg13[%c6, %c0_41, %c0_42] : memref<7x16x128xf32, #tpu.memory_space<vmem>>, vector<1x16x128xf32>
    %62 = vector.shape_cast %61 : vector<1x16x128xf32> to vector<16x128xf32>
    %63 = vector.shape_cast %30 : vector<16x128xf32> to vector<1x16x128xf32>
    tpu.vector_store %arg13[%c6, %c0_41, %c0_42], %63 {strides = array<i32>} : memref<7x16x128xf32, #tpu.memory_space<vmem>>, vector<1x16x128xf32>,
    return
  }
  func.func @transform_0(%arg0: i32) -> (i32, i32) {
    %c0_i32 = arith.constant 0 : i32
    %c0_i32_0 = arith.constant 0 : i32
    %c0_i32_1 = arith.constant 0 : i32
    return %c0_i32, %c0_i32_0 : i32, i32
  }
  func.func @transform_1(%arg0: i32) -> (i32, i32) {
    %c0_i32 = arith.constant 0 : i32
    %c0_i32_0 = arith.constant 0 : i32
    %c0_i32_1 = arith.constant 0 : i32
    return %c0_i32, %c0_i32_0 : i32, i32
  }
  func.func @transform_2(%arg0: i32) -> (i32, i32) {
    %c0_i32 = arith.constant 0 : i32
    %c0_i32_0 = arith.constant 0 : i32
    %c0_i32_1 = arith.constant 0 : i32
    return %c0_i32, %c0_i32_0 : i32, i32
  }
  func.func @transform_3(%arg0: i32) -> (i32, i32) {
    %c0_i32 = arith.constant 0 : i32
    %c0_i32_0 = arith.constant 0 : i32
    return %c0_i32, %arg0 : i32, i32
  }
  func.func @transform_4(%arg0: i32) -> (i32, i32) {
    %c0_i32 = arith.constant 0 : i32
    %c0_i32_0 = arith.constant 0 : i32
    return %c0_i32, %arg0 : i32, i32
  }
  func.func @transform_5(%arg0: i32) -> (i32, i32) {
    %c0_i32 = arith.constant 0 : i32
    %c0_i32_0 = arith.constant 0 : i32
    return %c0_i32, %arg0 : i32, i32
  }
  func.func @transform_6(%arg0: i32) -> (i32, i32) {
    %c0_i32 = arith.constant 0 : i32
    %c0_i32_0 = arith.constant 0 : i32
    return %c0_i32, %arg0 : i32, i32
  }
  func.func @transform_7(%arg0: i32) -> (i32, i32) {
    %c0_i32 = arith.constant 0 : i32
    %c0_i32_0 = arith.constant 0 : i32
    return %c0_i32, %arg0 : i32, i32
  }
  func.func @transform_8(%arg0: i32) -> (i32, i32) {
    %c0_i32 = arith.constant 0 : i32
    %c0_i32_0 = arith.constant 0 : i32
    return %c0_i32, %arg0 : i32, i32
  }
  func.func @transform_9(%arg0: i32) -> (i32, i32) {
    %c0_i32 = arith.constant 0 : i32
    %c0_i32_0 = arith.constant 0 : i32
    return %c0_i32, %arg0 : i32, i32
  }
  func.func @transform_10(%arg0: i32) -> (i32, i32) {
    %c0_i32 = arith.constant 0 : i32
    %c0_i32_0 = arith.constant 0 : i32
    return %c0_i32, %arg0 : i32, i32
  }
  func.func @transform_11(%arg0: i32) -> (i32, i32) {
    %c0_i32 = arith.constant 0 : i32
    %c0_i32_0 = arith.constant 0 : i32
    return %c0_i32, %arg0 : i32, i32
  }
  func.func @transform_12(%arg0: i32) -> (i32, i32, i32) {
    %c0_i32 = arith.constant 0 : i32
    %c0_i32_0 = arith.constant 0 : i32
    %c0_i32_1 = arith.constant 0 : i32
    return %c0_i32, %c0_i32_0, %arg0 : i32, i32, i32
  }
}

module attributes {stable_mosaic.version = 11 : i64} {
  func.func @encode_kernel(%arg0: i32, %arg1: memref<16x128xf32, #tpu.memory_space<vmem>>, %arg2: memref<1x128xf32, #tpu.memory_space<vmem>>, %arg3: memref<1x128xf32, #tpu.memory_space<vmem>>, %arg4: memref<16x1xf32, #tpu.memory_space<vmem>>, %arg5: memref<128x24xbf16, #tpu.memory_space<vmem>>, %arg6: memref<1x24xf32, #tpu.memory_space<vmem>>, %arg7: memref<1x24xf32, #tpu.memory_space<vmem>>, %arg8: memref<1x24xf32, #tpu.memory_space<vmem>>, %arg9: memref<1x24xf32, #tpu.memory_space<vmem>>, %arg10: memref<24x16xbf16, #tpu.memory_space<vmem>>, %arg11: memref<1x16xf32, #tpu.memory_space<vmem>>, %arg12: memref<1x16xf32, #tpu.memory_space<vmem>>, %arg13: memref<1x16xf32, #tpu.memory_space<vmem>>, %arg14: memref<1x16xf32, #tpu.memory_space<vmem>>, %arg15: memref<16x16xbf16, #tpu.memory_space<vmem>>, %arg16: memref<1x16xf32, #tpu.memory_space<vmem>>, %arg17: memref<1x16xf32, #tpu.memory_space<vmem>>, %arg18: memref<1x16xf32, #tpu.memory_space<vmem>>, %arg19: memref<1x16xf32, #tpu.memory_space<vmem>>, %arg20: memref<16x24xbf16, #tpu.memory_space<vmem>>, %arg21: memref<1x24xf32, #tpu.memory_space<vmem>>, %arg22: memref<1x24xf32, #tpu.memory_space<vmem>>, %arg23: memref<1x24xf32, #tpu.memory_space<vmem>>, %arg24: memref<1x24xf32, #tpu.memory_space<vmem>>, %arg25: memref<16x24xf32, #tpu.memory_space<vmem>>, %arg26: memref<16x24xf32, #tpu.memory_space<vmem>>) attributes {dimension_semantics = [#tpu.dimension_semantics<arbitrary>], iteration_bounds = array<i64: 1>, scalar_prefetch = 0 : i64, scratch_operands = 1 : i64, tpu.core_type = #tpu.core_type<tc>, window_params = [{transform_indices = @transform_0, window_bounds = array<i64: 16, 128>}, {transform_indices = @transform_1, window_bounds = array<i64: 1, 128>}, {transform_indices = @transform_2, window_bounds = array<i64: 1, 128>}, {pipeline_mode = #tpu.pipeline_mode<synchronous>, transform_indices = @transform_3, window_bounds = array<i64: 16, 1>}, {transform_indices = @transform_4, window_bounds = array<i64: 128, 24>}, {pipeline_mode = #tpu.pipeline_mode<synchronous>, transform_indices = @transform_5, window_bounds = array<i64: 1, 24>}, {pipeline_mode = #tpu.pipeline_mode<synchronous>, transform_indices = @transform_6, window_bounds = array<i64: 1, 24>}, {pipeline_mode = #tpu.pipeline_mode<synchronous>, transform_indices = @transform_7, window_bounds = array<i64: 1, 24>}, {pipeline_mode = #tpu.pipeline_mode<synchronous>, transform_indices = @transform_8, window_bounds = array<i64: 1, 24>}, {pipeline_mode = #tpu.pipeline_mode<synchronous>, transform_indices = @transform_9, window_bounds = array<i64: 24, 16>}, {pipeline_mode = #tpu.pipeline_mode<synchronous>, transform_indices = @transform_10, window_bounds = array<i64: 1, 16>}, {pipeline_mode = #tpu.pipeline_mode<synchronous>, transform_indices = @transform_11, window_bounds = array<i64: 1, 16>}, {pipeline_mode = #tpu.pipeline_mode<synchronous>, transform_indices = @transform_12, window_bounds = array<i64: 1, 16>}, {pipeline_mode = #tpu.pipeline_mode<synchronous>, transform_indices = @transform_13, window_bounds = array<i64: 1, 16>}, {pipeline_mode = #tpu.pipeline_mode<synchronous>, transform_indices = @transform_14, window_bounds = array<i64: 16, 16>}, {pipeline_mode = #tpu.pipeline_mode<synchronous>, transform_indices = @transform_15, window_bounds = array<i64: 1, 16>}, {pipeline_mode = #tpu.pipeline_mode<synchronous>, transform_indices = @transform_16, window_bounds = array<i64: 1, 16>}, {pipeline_mode = #tpu.pipeline_mode<synchronous>, transform_indices = @transform_17, window_bounds = array<i64: 1, 16>}, {pipeline_mode = #tpu.pipeline_mode<synchronous>, transform_indices = @transform_18, window_bounds = array<i64: 1, 16>}, {pipeline_mode = #tpu.pipeline_mode<synchronous>, transform_indices = @transform_19, window_bounds = array<i64: 16, 24>}, {pipeline_mode = #tpu.pipeline_mode<synchronous>, transform_indices = @transform_20, window_bounds = array<i64: 1, 24>}, {pipeline_mode = #tpu.pipeline_mode<synchronous>, transform_indices = @transform_21, window_bounds = array<i64: 1, 24>}, {pipeline_mode = #tpu.pipeline_mode<synchronous>, transform_indices = @transform_22, window_bounds = array<i64: 1, 24>}, {pipeline_mode = #tpu.pipeline_mode<synchronous>, transform_indices = @transform_23, window_bounds = array<i64: 1, 24>}, {pipeline_mode = #tpu.pipeline_mode<synchronous>, transform_indices = @transform_24, window_bounds = array<i64: 16, 24>}]} {
    %c0_i32 = arith.constant 0 : i32
    %0 = arith.cmpi eq, %arg0, %c0_i32 : i32
    %1 = arith.extui %0 : i1 to i32
    %c0_i32_0 = arith.constant 0 : i32
    %2 = arith.cmpi ne, %1, %c0_i32_0 : i32
    scf.if %2 {
      %cst_17 = arith.constant 0.000000e+00 : f32
      %25 = vector.broadcast %cst_17 : f32 to vector<16x24xf32>
      %c0_18 = arith.constant 0 : index
      %c0_19 = arith.constant 0 : index
      %26 = vector.load %arg26[%c0_18, %c0_19] : memref<16x24xf32, #tpu.memory_space<vmem>>, vector<16x24xf32>
      tpu.vector_store %arg26[%c0_18, %c0_19], %25 {strides = array<i32>} : memref<16x24xf32, #tpu.memory_space<vmem>>, vector<16x24xf32>,
    } else {
    }
    %c0 = arith.constant 0 : index
    %c0_1 = arith.constant 0 : index
    %3 = vector.load %arg1[%c0, %c0_1] : memref<16x128xf32, #tpu.memory_space<vmem>>, vector<16x128xf32>
    %c0_2 = arith.constant 0 : index
    %c0_3 = arith.constant 0 : index
    %4 = vector.load %arg4[%c0_2, %c0_3] : memref<16x1xf32, #tpu.memory_space<vmem>>, vector<16x1xf32>
    %5 = vector.broadcast %4 : vector<16x1xf32> to vector<16x128xf32>
    %6 = arith.mulf %3, %5 : vector<16x128xf32>
    %cst = arith.constant 1.000000e+00 : f32
    %7 = vector.broadcast %cst : f32 to vector<16x128xf32>
    %8 = arith.addf %6, %7 : vector<16x128xf32>
    %9 = math.log %8 : vector<16x128xf32>
    %c0_4 = arith.constant 0 : index
    %c0_5 = arith.constant 0 : index
    %10 = vector.load %arg2[%c0_4, %c0_5] : memref<1x128xf32, #tpu.memory_space<vmem>>, vector<1x128xf32>
    %11 = vector.broadcast %10 : vector<1x128xf32> to vector<16x128xf32>
    %12 = arith.mulf %9, %11 : vector<16x128xf32>
    %c0_6 = arith.constant 0 : index
    %c0_7 = arith.constant 0 : index
    %13 = vector.load %arg3[%c0_6, %c0_7] : memref<1x128xf32, #tpu.memory_space<vmem>>, vector<1x128xf32>
    %14 = vector.broadcast %13 : vector<1x128xf32> to vector<16x128xf32>
    %15 = arith.addf %12, %14 : vector<16x128xf32>
    %c0_8 = arith.constant 0 : index
    %c0_9 = arith.constant 0 : index
    %16 = vector.load %arg26[%c0_8, %c0_9] : memref<16x24xf32, #tpu.memory_space<vmem>>, vector<16x24xf32>
    %c0_10 = arith.constant 0 : index
    %c0_11 = arith.constant 0 : index
    %17 = vector.load %arg5[%c0_10, %c0_11] : memref<128x24xbf16, #tpu.memory_space<vmem>>, vector<128x24xbf16>
    %18 = arith.truncf %15 : vector<16x128xf32> to vector<16x128xbf16>
    %cst_12 = arith.constant dense<0.000000e+00> : vector<16x24xf32>
    %19 = tpu.matmul %18, %17, %cst_12 {dimension_numbers = #tpu.dot_dimension_numbers<[1], [0], [0], [1], [0, 0, 1, 1], [], []>} : vector<16x128xbf16>, vector<128x24xbf16>, vector<16x24xf32> -> vector<16x24xf32>
    %20 = arith.addf %16, %19 : vector<16x24xf32>
    %c0_13 = arith.constant 0 : index
    %c0_14 = arith.constant 0 : index
    %21 = vector.load %arg26[%c0_13, %c0_14] : memref<16x24xf32, #tpu.memory_space<vmem>>, vector<16x24xf32>
    tpu.vector_store %arg26[%c0_13, %c0_14], %20 {strides = array<i32>} : memref<16x24xf32, #tpu.memory_space<vmem>>, vector<16x24xf32>,
    %c0_i32_15 = arith.constant 0 : i32
    %22 = arith.cmpi eq, %arg0, %c0_i32_15 : i32
    %23 = arith.extui %22 : i1 to i32
    %c0_i32_16 = arith.constant 0 : i32
    %24 = arith.cmpi ne, %23, %c0_i32_16 : i32
    scf.if %24 {
      %25 = tpu.iota {dimensions = array<i32: 0>} : vector<16x1xi32>
      %c8_i32 = arith.constant 8 : i32
      %26 = vector.broadcast %c8_i32 : i32 to vector<16x1xi32>
      %27 = arith.cmpi slt, %25, %26 : vector<16x1xi32>
      %28 = arith.extui %27 : vector<16x1xi1> to vector<16x1xi32>
      %29 = arith.sitofp %28 : vector<16x1xi32> to vector<16x1xf32>
      %c0_17 = arith.constant 0 : index
      %c0_18 = arith.constant 0 : index
      %30 = vector.load %arg26[%c0_17, %c0_18] : memref<16x24xf32, #tpu.memory_space<vmem>>, vector<16x24xf32>
      %c0_19 = arith.constant 0 : index
      %c0_20 = arith.constant 0 : index
      %31 = vector.load %arg6[%c0_19, %c0_20] : memref<1x24xf32, #tpu.memory_space<vmem>>, vector<1x24xf32>
      %c0_21 = arith.constant 0 : index
      %c0_22 = arith.constant 0 : index
      %32 = vector.load %arg7[%c0_21, %c0_22] : memref<1x24xf32, #tpu.memory_space<vmem>>, vector<1x24xf32>
      %c0_23 = arith.constant 0 : index
      %c0_24 = arith.constant 0 : index
      %33 = vector.load %arg8[%c0_23, %c0_24] : memref<1x24xf32, #tpu.memory_space<vmem>>, vector<1x24xf32>
      %c0_25 = arith.constant 0 : index
      %c0_26 = arith.constant 0 : index
      %34 = vector.load %arg9[%c0_25, %c0_26] : memref<1x24xf32, #tpu.memory_space<vmem>>, vector<1x24xf32>
      %35 = vector.broadcast %29 : vector<16x1xf32> to vector<16x24xf32>
      %36 = arith.mulf %30, %35 : vector<16x24xf32>
      %cst_27 = arith.constant dense<0.000000e+00> : vector<24xf32>
      %37 = vector.multi_reduction <add>, %36, %cst_27 [0] : vector<16x24xf32> to vector<24xf32>
      %38 = vector.shape_cast %37 : vector<24xf32> to vector<1x24xf32>
      %cst_28 = arith.constant 1.250000e-01 : f32
      %39 = vector.broadcast %cst_28 : f32 to vector<1x24xf32>
      %40 = arith.mulf %38, %39 : vector<1x24xf32>
      %41 = arith.mulf %30, %30 : vector<16x24xf32>
      %42 = vector.broadcast %29 : vector<16x1xf32> to vector<16x24xf32>
      %43 = arith.mulf %41, %42 : vector<16x24xf32>
      %cst_29 = arith.constant dense<0.000000e+00> : vector<24xf32>
      %44 = vector.multi_reduction <add>, %43, %cst_29 [0] : vector<16x24xf32> to vector<24xf32>
      %45 = vector.shape_cast %44 : vector<24xf32> to vector<1x24xf32>
      %cst_30 = arith.constant 1.250000e-01 : f32
      %46 = vector.broadcast %cst_30 : f32 to vector<1x24xf32>
      %47 = arith.mulf %45, %46 : vector<1x24xf32>
      %48 = arith.mulf %40, %40 : vector<1x24xf32>
      %49 = arith.subf %47, %48 : vector<1x24xf32>
      %cst_31 = arith.constant 0.000000e+00 : f32
      %50 = vector.broadcast %cst_31 : f32 to vector<1x24xf32>
      %51 = arith.maximumf %49, %50 : vector<1x24xf32>
      %cst_32 = arith.constant 9.99999974E-6 : f32
      %52 = vector.broadcast %cst_32 : f32 to vector<1x24xf32>
      %53 = arith.addf %51, %52 : vector<1x24xf32>
      %54 = math.rsqrt %53 : vector<1x24xf32>
      %55 = arith.mulf %54, %31 : vector<1x24xf32>
      %56 = arith.mulf %40, %55 : vector<1x24xf32>
      %57 = arith.subf %32, %56 : vector<1x24xf32>
      %58 = vector.broadcast %55 : vector<1x24xf32> to vector<16x24xf32>
      %59 = arith.mulf %30, %58 : vector<16x24xf32>
      %60 = vector.broadcast %57 : vector<1x24xf32> to vector<16x24xf32>
      %61 = arith.addf %59, %60 : vector<16x24xf32>
      %cst_33 = arith.constant 2.000000e-01 : f32
      %62 = vector.broadcast %cst_33 : f32 to vector<16x24xf32>
      %63 = arith.mulf %62, %61 : vector<16x24xf32>
      %64 = arith.maximumf %61, %63 : vector<16x24xf32>
      %65 = vector.broadcast %33 : vector<1x24xf32> to vector<16x24xf32>
      %66 = arith.mulf %64, %65 : vector<16x24xf32>
      %67 = vector.broadcast %34 : vector<1x24xf32> to vector<16x24xf32>
      %68 = arith.addf %66, %67 : vector<16x24xf32>
      %c0_34 = arith.constant 0 : index
      %c0_35 = arith.constant 0 : index
      %69 = vector.load %arg10[%c0_34, %c0_35] : memref<24x16xbf16, #tpu.memory_space<vmem>>, vector<24x16xbf16>
      %70 = arith.truncf %68 : vector<16x24xf32> to vector<16x24xbf16>
      %cst_36 = arith.constant dense<0.000000e+00> : vector<16x16xf32>
      %71 = tpu.matmul %70, %69, %cst_36 {dimension_numbers = #tpu.dot_dimension_numbers<[1], [0], [0], [1], [0, 0, 1, 1], [], []>} : vector<16x24xbf16>, vector<24x16xbf16>, vector<16x16xf32> -> vector<16x16xf32>
      %c0_37 = arith.constant 0 : index
      %c0_38 = arith.constant 0 : index
      %72 = vector.load %arg11[%c0_37, %c0_38] : memref<1x16xf32, #tpu.memory_space<vmem>>, vector<1x16xf32>
      %c0_39 = arith.constant 0 : index
      %c0_40 = arith.constant 0 : index
      %73 = vector.load %arg12[%c0_39, %c0_40] : memref<1x16xf32, #tpu.memory_space<vmem>>, vector<1x16xf32>
      %c0_41 = arith.constant 0 : index
      %c0_42 = arith.constant 0 : index
      %74 = vector.load %arg13[%c0_41, %c0_42] : memref<1x16xf32, #tpu.memory_space<vmem>>, vector<1x16xf32>
      %c0_43 = arith.constant 0 : index
      %c0_44 = arith.constant 0 : index
      %75 = vector.load %arg14[%c0_43, %c0_44] : memref<1x16xf32, #tpu.memory_space<vmem>>, vector<1x16xf32>
      %76 = vector.broadcast %29 : vector<16x1xf32> to vector<16x16xf32>
      %77 = arith.mulf %71, %76 : vector<16x16xf32>
      %cst_45 = arith.constant dense<0.000000e+00> : vector<16xf32>
      %78 = vector.multi_reduction <add>, %77, %cst_45 [0] : vector<16x16xf32> to vector<16xf32>
      %79 = vector.shape_cast %78 : vector<16xf32> to vector<1x16xf32>
      %cst_46 = arith.constant 1.250000e-01 : f32
      %80 = vector.broadcast %cst_46 : f32 to vector<1x16xf32>
      %81 = arith.mulf %79, %80 : vector<1x16xf32>
      %82 = arith.mulf %71, %71 : vector<16x16xf32>
      %83 = vector.broadcast %29 : vector<16x1xf32> to vector<16x16xf32>
      %84 = arith.mulf %82, %83 : vector<16x16xf32>
      %cst_47 = arith.constant dense<0.000000e+00> : vector<16xf32>
      %85 = vector.multi_reduction <add>, %84, %cst_47 [0] : vector<16x16xf32> to vector<16xf32>
      %86 = vector.shape_cast %85 : vector<16xf32> to vector<1x16xf32>
      %cst_48 = arith.constant 1.250000e-01 : f32
      %87 = vector.broadcast %cst_48 : f32 to vector<1x16xf32>
      %88 = arith.mulf %86, %87 : vector<1x16xf32>
      %89 = arith.mulf %81, %81 : vector<1x16xf32>
      %90 = arith.subf %88, %89 : vector<1x16xf32>
      %cst_49 = arith.constant 0.000000e+00 : f32
      %91 = vector.broadcast %cst_49 : f32 to vector<1x16xf32>
      %92 = arith.maximumf %90, %91 : vector<1x16xf32>
      %cst_50 = arith.constant 9.99999974E-6 : f32
      %93 = vector.broadcast %cst_50 : f32 to vector<1x16xf32>
      %94 = arith.addf %92, %93 : vector<1x16xf32>
      %95 = math.rsqrt %94 : vector<1x16xf32>
      %96 = arith.mulf %95, %72 : vector<1x16xf32>
      %97 = arith.mulf %81, %96 : vector<1x16xf32>
      %98 = arith.subf %73, %97 : vector<1x16xf32>
      %99 = vector.broadcast %96 : vector<1x16xf32> to vector<16x16xf32>
      %100 = arith.mulf %71, %99 : vector<16x16xf32>
      %101 = vector.broadcast %98 : vector<1x16xf32> to vector<16x16xf32>
      %102 = arith.addf %100, %101 : vector<16x16xf32>
      %cst_51 = arith.constant 2.000000e-01 : f32
      %103 = vector.broadcast %cst_51 : f32 to vector<16x16xf32>
      %104 = arith.mulf %103, %102 : vector<16x16xf32>
      %105 = arith.maximumf %102, %104 : vector<16x16xf32>
      %106 = vector.broadcast %74 : vector<1x16xf32> to vector<16x16xf32>
      %107 = arith.mulf %105, %106 : vector<16x16xf32>
      %108 = vector.broadcast %75 : vector<1x16xf32> to vector<16x16xf32>
      %109 = arith.addf %107, %108 : vector<16x16xf32>
      %c0_52 = arith.constant 0 : index
      %c0_53 = arith.constant 0 : index
      %110 = vector.load %arg15[%c0_52, %c0_53] : memref<16x16xbf16, #tpu.memory_space<vmem>>, vector<16x16xbf16>
      %111 = arith.truncf %109 : vector<16x16xf32> to vector<16x16xbf16>
      %cst_54 = arith.constant dense<0.000000e+00> : vector<16x16xf32>
      %112 = tpu.matmul %111, %110, %cst_54 {dimension_numbers = #tpu.dot_dimension_numbers<[1], [0], [0], [1], [0, 0, 1, 1], [], []>} : vector<16x16xbf16>, vector<16x16xbf16>, vector<16x16xf32> -> vector<16x16xf32>
      %c0_55 = arith.constant 0 : index
      %c0_56 = arith.constant 0 : index
      %113 = vector.load %arg16[%c0_55, %c0_56] : memref<1x16xf32, #tpu.memory_space<vmem>>, vector<1x16xf32>
      %c0_57 = arith.constant 0 : index
      %c0_58 = arith.constant 0 : index
      %114 = vector.load %arg17[%c0_57, %c0_58] : memref<1x16xf32, #tpu.memory_space<vmem>>, vector<1x16xf32>
      %c0_59 = arith.constant 0 : index
      %c0_60 = arith.constant 0 : index
      %115 = vector.load %arg18[%c0_59, %c0_60] : memref<1x16xf32, #tpu.memory_space<vmem>>, vector<1x16xf32>
      %c0_61 = arith.constant 0 : index
      %c0_62 = arith.constant 0 : index
      %116 = vector.load %arg19[%c0_61, %c0_62] : memref<1x16xf32, #tpu.memory_space<vmem>>, vector<1x16xf32>
      %117 = vector.broadcast %29 : vector<16x1xf32> to vector<16x16xf32>
      %118 = arith.mulf %112, %117 : vector<16x16xf32>
      %cst_63 = arith.constant dense<0.000000e+00> : vector<16xf32>
      %119 = vector.multi_reduction <add>, %118, %cst_63 [0] : vector<16x16xf32> to vector<16xf32>
      %120 = vector.shape_cast %119 : vector<16xf32> to vector<1x16xf32>
      %cst_64 = arith.constant 1.250000e-01 : f32
      %121 = vector.broadcast %cst_64 : f32 to vector<1x16xf32>
      %122 = arith.mulf %120, %121 : vector<1x16xf32>
      %123 = arith.mulf %112, %112 : vector<16x16xf32>
      %124 = vector.broadcast %29 : vector<16x1xf32> to vector<16x16xf32>
      %125 = arith.mulf %123, %124 : vector<16x16xf32>
      %cst_65 = arith.constant dense<0.000000e+00> : vector<16xf32>
      %126 = vector.multi_reduction <add>, %125, %cst_65 [0] : vector<16x16xf32> to vector<16xf32>
      %127 = vector.shape_cast %126 : vector<16xf32> to vector<1x16xf32>
      %cst_66 = arith.constant 1.250000e-01 : f32
      %128 = vector.broadcast %cst_66 : f32 to vector<1x16xf32>
      %129 = arith.mulf %127, %128 : vector<1x16xf32>
      %130 = arith.mulf %122, %122 : vector<1x16xf32>
      %131 = arith.subf %129, %130 : vector<1x16xf32>
      %cst_67 = arith.constant 0.000000e+00 : f32
      %132 = vector.broadcast %cst_67 : f32 to vector<1x16xf32>
      %133 = arith.maximumf %131, %132 : vector<1x16xf32>
      %cst_68 = arith.constant 9.99999974E-6 : f32
      %134 = vector.broadcast %cst_68 : f32 to vector<1x16xf32>
      %135 = arith.addf %133, %134 : vector<1x16xf32>
      %136 = math.rsqrt %135 : vector<1x16xf32>
      %137 = arith.mulf %136, %113 : vector<1x16xf32>
      %138 = arith.mulf %122, %137 : vector<1x16xf32>
      %139 = arith.subf %114, %138 : vector<1x16xf32>
      %140 = vector.broadcast %137 : vector<1x16xf32> to vector<16x16xf32>
      %141 = arith.mulf %112, %140 : vector<16x16xf32>
      %142 = vector.broadcast %139 : vector<1x16xf32> to vector<16x16xf32>
      %143 = arith.addf %141, %142 : vector<16x16xf32>
      %cst_69 = arith.constant 2.000000e-01 : f32
      %144 = vector.broadcast %cst_69 : f32 to vector<16x16xf32>
      %145 = arith.mulf %144, %143 : vector<16x16xf32>
      %146 = arith.maximumf %143, %145 : vector<16x16xf32>
      %147 = vector.broadcast %115 : vector<1x16xf32> to vector<16x16xf32>
      %148 = arith.mulf %146, %147 : vector<16x16xf32>
      %149 = vector.broadcast %116 : vector<1x16xf32> to vector<16x16xf32>
      %150 = arith.addf %148, %149 : vector<16x16xf32>
      %c0_70 = arith.constant 0 : index
      %c0_71 = arith.constant 0 : index
      %151 = vector.load %arg20[%c0_70, %c0_71] : memref<16x24xbf16, #tpu.memory_space<vmem>>, vector<16x24xbf16>
      %152 = arith.truncf %150 : vector<16x16xf32> to vector<16x16xbf16>
      %cst_72 = arith.constant dense<0.000000e+00> : vector<16x24xf32>
      %153 = tpu.matmul %152, %151, %cst_72 {dimension_numbers = #tpu.dot_dimension_numbers<[1], [0], [0], [1], [0, 0, 1, 1], [], []>} : vector<16x16xbf16>, vector<16x24xbf16>, vector<16x24xf32> -> vector<16x24xf32>
      %c0_73 = arith.constant 0 : index
      %c0_74 = arith.constant 0 : index
      %154 = vector.load %arg21[%c0_73, %c0_74] : memref<1x24xf32, #tpu.memory_space<vmem>>, vector<1x24xf32>
      %c0_75 = arith.constant 0 : index
      %c0_76 = arith.constant 0 : index
      %155 = vector.load %arg22[%c0_75, %c0_76] : memref<1x24xf32, #tpu.memory_space<vmem>>, vector<1x24xf32>
      %c0_77 = arith.constant 0 : index
      %c0_78 = arith.constant 0 : index
      %156 = vector.load %arg23[%c0_77, %c0_78] : memref<1x24xf32, #tpu.memory_space<vmem>>, vector<1x24xf32>
      %c0_79 = arith.constant 0 : index
      %c0_80 = arith.constant 0 : index
      %157 = vector.load %arg24[%c0_79, %c0_80] : memref<1x24xf32, #tpu.memory_space<vmem>>, vector<1x24xf32>
      %158 = vector.broadcast %29 : vector<16x1xf32> to vector<16x24xf32>
      %159 = arith.mulf %153, %158 : vector<16x24xf32>
      %cst_81 = arith.constant dense<0.000000e+00> : vector<24xf32>
      %160 = vector.multi_reduction <add>, %159, %cst_81 [0] : vector<16x24xf32> to vector<24xf32>
      %161 = vector.shape_cast %160 : vector<24xf32> to vector<1x24xf32>
      %cst_82 = arith.constant 1.250000e-01 : f32
      %162 = vector.broadcast %cst_82 : f32 to vector<1x24xf32>
      %163 = arith.mulf %161, %162 : vector<1x24xf32>
      %164 = arith.mulf %153, %153 : vector<16x24xf32>
      %165 = vector.broadcast %29 : vector<16x1xf32> to vector<16x24xf32>
      %166 = arith.mulf %164, %165 : vector<16x24xf32>
      %cst_83 = arith.constant dense<0.000000e+00> : vector<24xf32>
      %167 = vector.multi_reduction <add>, %166, %cst_83 [0] : vector<16x24xf32> to vector<24xf32>
      %168 = vector.shape_cast %167 : vector<24xf32> to vector<1x24xf32>
      %cst_84 = arith.constant 1.250000e-01 : f32
      %169 = vector.broadcast %cst_84 : f32 to vector<1x24xf32>
      %170 = arith.mulf %168, %169 : vector<1x24xf32>
      %171 = arith.mulf %163, %163 : vector<1x24xf32>
      %172 = arith.subf %170, %171 : vector<1x24xf32>
      %cst_85 = arith.constant 0.000000e+00 : f32
      %173 = vector.broadcast %cst_85 : f32 to vector<1x24xf32>
      %174 = arith.maximumf %172, %173 : vector<1x24xf32>
      %cst_86 = arith.constant 9.99999974E-6 : f32
      %175 = vector.broadcast %cst_86 : f32 to vector<1x24xf32>
      %176 = arith.addf %174, %175 : vector<1x24xf32>
      %177 = math.rsqrt %176 : vector<1x24xf32>
      %178 = arith.mulf %177, %154 : vector<1x24xf32>
      %179 = arith.mulf %163, %178 : vector<1x24xf32>
      %180 = arith.subf %155, %179 : vector<1x24xf32>
      %181 = vector.broadcast %178 : vector<1x24xf32> to vector<16x24xf32>
      %182 = arith.mulf %153, %181 : vector<16x24xf32>
      %183 = vector.broadcast %180 : vector<1x24xf32> to vector<16x24xf32>
      %184 = arith.addf %182, %183 : vector<16x24xf32>
      %cst_87 = arith.constant 2.000000e-01 : f32
      %185 = vector.broadcast %cst_87 : f32 to vector<16x24xf32>
      %186 = arith.mulf %185, %184 : vector<16x24xf32>
      %187 = arith.maximumf %184, %186 : vector<16x24xf32>
      %188 = vector.broadcast %156 : vector<1x24xf32> to vector<16x24xf32>
      %189 = arith.mulf %187, %188 : vector<16x24xf32>
      %190 = vector.broadcast %157 : vector<1x24xf32> to vector<16x24xf32>
      %191 = arith.addf %189, %190 : vector<16x24xf32>
      %c0_88 = arith.constant 0 : index
      %c0_89 = arith.constant 0 : index
      %192 = vector.load %arg25[%c0_88, %c0_89] : memref<16x24xf32, #tpu.memory_space<vmem>>, vector<16x24xf32>
      tpu.vector_store %arg25[%c0_88, %c0_89], %191 {strides = array<i32>} : memref<16x24xf32, #tpu.memory_space<vmem>>, vector<16x24xf32>,
    } else {
    }
    return
  }
  func.func @transform_0(%arg0: i32) -> (i32, i32) {
    %c0_i32 = arith.constant 0 : i32
    %c0_i32_0 = arith.constant 0 : i32
    return %c0_i32, %arg0 : i32, i32
  }
  func.func @transform_1(%arg0: i32) -> (i32, i32) {
    %c0_i32 = arith.constant 0 : i32
    %c0_i32_0 = arith.constant 0 : i32
    return %c0_i32, %arg0 : i32, i32
  }
  func.func @transform_2(%arg0: i32) -> (i32, i32) {
    %c0_i32 = arith.constant 0 : i32
    %c0_i32_0 = arith.constant 0 : i32
    return %c0_i32, %arg0 : i32, i32
  }
  func.func @transform_3(%arg0: i32) -> (i32, i32) {
    %c0_i32 = arith.constant 0 : i32
    %c0_i32_0 = arith.constant 0 : i32
    %c0_i32_1 = arith.constant 0 : i32
    return %c0_i32, %c0_i32_0 : i32, i32
  }
  func.func @transform_4(%arg0: i32) -> (i32, i32) {
    %c0_i32 = arith.constant 0 : i32
    %c0_i32_0 = arith.constant 0 : i32
    return %arg0, %c0_i32 : i32, i32
  }
  func.func @transform_5(%arg0: i32) -> (i32, i32) {
    %c0_i32 = arith.constant 0 : i32
    %c0_i32_0 = arith.constant 0 : i32
    %c0_i32_1 = arith.constant 0 : i32
    return %c0_i32, %c0_i32_0 : i32, i32
  }
  func.func @transform_6(%arg0: i32) -> (i32, i32) {
    %c0_i32 = arith.constant 0 : i32
    %c0_i32_0 = arith.constant 0 : i32
    %c0_i32_1 = arith.constant 0 : i32
    return %c0_i32, %c0_i32_0 : i32, i32
  }
  func.func @transform_7(%arg0: i32) -> (i32, i32) {
    %c0_i32 = arith.constant 0 : i32
    %c0_i32_0 = arith.constant 0 : i32
    %c0_i32_1 = arith.constant 0 : i32
    return %c0_i32, %c0_i32_0 : i32, i32
  }
  func.func @transform_8(%arg0: i32) -> (i32, i32) {
    %c0_i32 = arith.constant 0 : i32
    %c0_i32_0 = arith.constant 0 : i32
    %c0_i32_1 = arith.constant 0 : i32
    return %c0_i32, %c0_i32_0 : i32, i32
  }
  func.func @transform_9(%arg0: i32) -> (i32, i32) {
    %c0_i32 = arith.constant 0 : i32
    %c0_i32_0 = arith.constant 0 : i32
    %c0_i32_1 = arith.constant 0 : i32
    return %c0_i32, %c0_i32_0 : i32, i32
  }
  func.func @transform_10(%arg0: i32) -> (i32, i32) {
    %c0_i32 = arith.constant 0 : i32
    %c0_i32_0 = arith.constant 0 : i32
    %c0_i32_1 = arith.constant 0 : i32
    return %c0_i32, %c0_i32_0 : i32, i32
  }
  func.func @transform_11(%arg0: i32) -> (i32, i32) {
    %c0_i32 = arith.constant 0 : i32
    %c0_i32_0 = arith.constant 0 : i32
    %c0_i32_1 = arith.constant 0 : i32
    return %c0_i32, %c0_i32_0 : i32, i32
  }
  func.func @transform_12(%arg0: i32) -> (i32, i32) {
    %c0_i32 = arith.constant 0 : i32
    %c0_i32_0 = arith.constant 0 : i32
    %c0_i32_1 = arith.constant 0 : i32
    return %c0_i32, %c0_i32_0 : i32, i32
  }
  func.func @transform_13(%arg0: i32) -> (i32, i32) {
    %c0_i32 = arith.constant 0 : i32
    %c0_i32_0 = arith.constant 0 : i32
    %c0_i32_1 = arith.constant 0 : i32
    return %c0_i32, %c0_i32_0 : i32, i32
  }
  func.func @transform_14(%arg0: i32) -> (i32, i32) {
    %c0_i32 = arith.constant 0 : i32
    %c0_i32_0 = arith.constant 0 : i32
    %c0_i32_1 = arith.constant 0 : i32
    return %c0_i32, %c0_i32_0 : i32, i32
  }
  func.func @transform_15(%arg0: i32) -> (i32, i32) {
    %c0_i32 = arith.constant 0 : i32
    %c0_i32_0 = arith.constant 0 : i32
    %c0_i32_1 = arith.constant 0 : i32
    return %c0_i32, %c0_i32_0 : i32, i32
  }
  func.func @transform_16(%arg0: i32) -> (i32, i32) {
    %c0_i32 = arith.constant 0 : i32
    %c0_i32_0 = arith.constant 0 : i32
    %c0_i32_1 = arith.constant 0 : i32
    return %c0_i32, %c0_i32_0 : i32, i32
  }
  func.func @transform_17(%arg0: i32) -> (i32, i32) {
    %c0_i32 = arith.constant 0 : i32
    %c0_i32_0 = arith.constant 0 : i32
    %c0_i32_1 = arith.constant 0 : i32
    return %c0_i32, %c0_i32_0 : i32, i32
  }
  func.func @transform_18(%arg0: i32) -> (i32, i32) {
    %c0_i32 = arith.constant 0 : i32
    %c0_i32_0 = arith.constant 0 : i32
    %c0_i32_1 = arith.constant 0 : i32
    return %c0_i32, %c0_i32_0 : i32, i32
  }
  func.func @transform_19(%arg0: i32) -> (i32, i32) {
    %c0_i32 = arith.constant 0 : i32
    %c0_i32_0 = arith.constant 0 : i32
    %c0_i32_1 = arith.constant 0 : i32
    return %c0_i32, %c0_i32_0 : i32, i32
  }
  func.func @transform_20(%arg0: i32) -> (i32, i32) {
    %c0_i32 = arith.constant 0 : i32
    %c0_i32_0 = arith.constant 0 : i32
    %c0_i32_1 = arith.constant 0 : i32
    return %c0_i32, %c0_i32_0 : i32, i32
  }
  func.func @transform_21(%arg0: i32) -> (i32, i32) {
    %c0_i32 = arith.constant 0 : i32
    %c0_i32_0 = arith.constant 0 : i32
    %c0_i32_1 = arith.constant 0 : i32
    return %c0_i32, %c0_i32_0 : i32, i32
  }
  func.func @transform_22(%arg0: i32) -> (i32, i32) {
    %c0_i32 = arith.constant 0 : i32
    %c0_i32_0 = arith.constant 0 : i32
    %c0_i32_1 = arith.constant 0 : i32
    return %c0_i32, %c0_i32_0 : i32, i32
  }
  func.func @transform_23(%arg0: i32) -> (i32, i32) {
    %c0_i32 = arith.constant 0 : i32
    %c0_i32_0 = arith.constant 0 : i32
    %c0_i32_1 = arith.constant 0 : i32
    return %c0_i32, %c0_i32_0 : i32, i32
  }
  func.func @transform_24(%arg0: i32) -> (i32, i32) {
    %c0_i32 = arith.constant 0 : i32
    %c0_i32_0 = arith.constant 0 : i32
    %c0_i32_1 = arith.constant 0 : i32
    return %c0_i32, %c0_i32_0 : i32, i32
  }
}

</mosaic_0001>

<bundles_post_ra>
// kernel: fnn_autoencoder_forward.2
= control target key start
LH: loop header
LB: loop body
LE: loop exit
PB: predicated region body
PF: predicated region fallthrough
CT: control target
= control target key end

     0   :  { %v823_v0 = vmov 0   ;;  %v824_v2 = vmov 0.0   ;;  %vm825_vm0 = vmmov 0   ;;  %vm82_vm1 = vcmask 195584   ;;  %s1116_s3 = inlined_call_operand.vmem [shape: f32[16,1], index: 3, kind: input, shape index: {}]   ;;  %s1117_s4 = inlined_call_operand.vmem [shape: bf16[128,24], index: 4, kind: input, shape index: {}]   ;;  %s1118_s0 = inlined_call_operand.vmem [shape: f32[16,128], index: 0, kind: input, shape index: {}]   ;;  %s1119_s1 = inlined_call_operand.vmem [shape: f32[1,128], index: 1, kind: input, shape index: {}]   ;;  %s1120_s2 = inlined_call_operand.vmem [shape: f32[1,128], index: 2, kind: input, shape index: {}]   ;;  %s1121_s9 = inlined_call_operand.vmem [shape: bf16[24,16], index: 9, kind: input, shape index: {}]   ;;  %s1122_s5 = inlined_call_operand.vmem [shape: f32[1,24], index: 5, kind: input, shape index: {}]   ;;  %s1123_s6 = inlined_call_operand.vmem [shape: f32[1,24], index: 6, kind: input, shape index: {}]   ;;  %s1124_s7 = inlined_call_operand.vmem [shape: f32[1,24], index: 7, kind: input, shape index: {}]   ;;  %s1125_s8 = inlined_call_operand.vmem [shape: f32[1,24], index: 8, kind: input, shape index: {}]   ;;  %s1126_s14 = inlined_call_operand.vmem [shape: bf16[16,16], index: 14, kind: input, shape index: {}]   ;;  %s1127_s10 = inlined_call_operand.vmem [shape: f32[1,16], index: 10, kind: input, shape index: {}]   ;;  %s1128_s11 = inlined_call_operand.vmem [shape: f32[1,16], index: 11, kind: input, shape index: {}]   ;;  %s1129_s12 = inlined_call_operand.vmem [shape: f32[1,16], index: 12, kind: input, shape index: {}]   ;;  %s1130_s13 = inlined_call_operand.vmem [shape: f32[1,16], index: 13, kind: input, shape index: {}]   ;;  %s1131_s19 = inlined_call_operand.vmem [shape: bf16[16,24], index: 19, kind: input, shape index: {}]   ;;  %s1132_s15 = inlined_call_operand.vmem [shape: f32[1,16], index: 15, kind: input, shape index: {}]   ;;  %s1133_s16 = inlined_call_operand.vmem [shape: f32[1,16], index: 16, kind: input, shape index: {}]   ;;  %s1134_s17 = inlined_call_operand.vmem [shape: f32[1,16], index: 17, kind: input, shape index: {}]   ;;  %s1135_s18 = inlined_call_operand.vmem [shape: f32[1,16], index: 18, kind: input, shape index: {}]   ;;  %s1136_s20 = inlined_call_operand.vmem [shape: f32[1,24], index: 20, kind: input, shape index: {}]   ;;  %s1137_s21 = inlined_call_operand.vmem [shape: f32[1,24], index: 21, kind: input, shape index: {}]   ;;  %s1138_s22 = inlined_call_operand.vmem [shape: f32[1,24], index: 22, kind: input, shape index: {}]   ;;  %s1139_s23 = inlined_call_operand.vmem [shape: f32[1,24], index: 23, kind: input, shape index: {}]   ;;  %s1140_s24 = inlined_call_operand.vmem [shape: f32[16,24], index: 24, kind: output, shape index: {}]  }
   0x1   :  { %1145 = sst [smem:[#allocation3_spill]] %s1116_s3  ;;  %798 = vset.pattern.permute.xlu0 %v823_v0  ;;  %755 = vmatprep.subr.bf16.mxu0 %v824_v2  ;;  %83 = vst.msk [vmem:[#allocation2] sm:$0xff] %vm82_vm1, %v824_v2  ;;  %84 = vst.msk [vmem:[#allocation2 + $0x8] sm:$0xff] %vm82_vm1, %v824_v2  ;;  %vm340_vm2 = vcmask 1043456   ;;  %vm391_vm3 = vcmask 130048  }
   0x2   :  { %1146 = sst [smem:[#allocation4_spill]] %s1117_s4  ;;  %s1154_s27 = sld [smem:[#allocation3_spill]]  ;;  %775 = vmatprep.subr.bf16.mxu1 %v824_v2  ;;  %771 = vmatprep.mubr.msk.bf16.mxu0 %vm825_vm0, %v824_v2 }
   0x3   :  { %1147 = sst [smem:[#allocation5_spill]] %s1118_s0  ;;  %s1155_s0 = sld [smem:[#allocation4_spill]]  ;;  %779 = vmatprep.mubr.msk.bf16.mxu1 %vm825_vm0, %v824_v2 }
   0x4   :  { %1148 = sst [smem:[#allocation6_spill]] %s1119_s1  ;;  %s1156_s3 = sld [smem:[#allocation5_spill]] }
   0x5   :  { %1149 = sst [smem:[#allocation7_spill]] %s1120_s2  ;;  %s1157_s4 = sld [smem:[#allocation6_spill]] }
   0x6   :  { %1150 = sst [smem:[#allocation8_spill]] %s1121_s9 }
   0x7   :  { %1151 = sst [smem:[#allocation9_spill]] %s1122_s5  ;;  %s1159_s29 = sld [smem:[#allocation8_spill]] }
   0x8   :  { %1152 = sst [smem:[#allocation10_spill]] %s1123_s6  ;;  %v87_v1 = vld [vmem:[%s1154_s27] sm:$0xff]  ;;  %v88_v4 = vld [vmem:[%s1154_s27 + $0x8] sm:$0xff]  ;;  %s1158_s27 = sld [smem:[#allocation7_spill]] }
   0x9   :  { %1153 = sst [smem:[#allocation11_spill]] %s1124_s7  ;;  %91 = vperm.xlu0 %798, %v87_v1   ;;  %v799_v3 = vld [vmem:[%s1155_s0] sm:$0xff]   ;;  %v800_v5 = vld [vmem:[%s1155_s0 + $0x8] sm:$0xff]   ;;  %v801_v6 = vld [vmem:[%s1155_s0 + $0x10] sm:$0xff]   ;;  %s1160_s25 = sld [smem:[#allocation9_spill]] }
   0xa   :  { %756 = vmatpush3.bf16.msra.mxu0 %v799_v3  ;;  %v802_v7 = vld [vmem:[%s1155_s0 + $0x18] sm:$0xff]   ;;  %v803_v8 = vld [vmem:[%s1155_s0 + $0x20] sm:$0xff]   ;;  %v804_v9 = vld [vmem:[%s1155_s0 + $0x28] sm:$0xff]   ;;  %s1161_s2 = sld [smem:[#allocation10_spill]]  ;;  %s1162_s26 = sld [smem:[#allocation11_spill]] }
   0xb   :  { %757 = vmatprep.subr.bf16.mxu0 %v824_v2  ;;  %v805_v10 = vld [vmem:[%s1155_s0 + $0x30] sm:$0xff]   ;;  %v806_v11 = vld [vmem:[%s1155_s0 + $0x38] sm:$0xff]   ;;  %v85_v12 = vld [vmem:[%s1156_s3] sm:$0xff] }
   0xc   :  { %v86_v15 = vld [vmem:[%s1156_s3 + $0x8] sm:$0xff]  ;;  %v714_v22 = vld [vmem:[%s1157_s4] ss:$0 sm:$0xff] }
   0xd   :  { %96 = vperm.xlu0 %798, %v88_v4   ;;  %v807_v31 = vld [vmem:[%s1159_s29] sm:$0xff]   ;;  %v808_v32 = vld [vmem:[%s1159_s29 + $0x8] ss:$0 sps:$4 sm:$0xff]  }
   0xe   :  { %758 = vmatpush3.bf16.msra.mxu0 %v800_v5  ;;  %v715_v26 = vld [vmem:[%s1158_s27] ss:$0 sm:$0xff]  ;;  %776 = vmatpush3.bf16.msra.mxu1 %v807_v31  ;;  %v342_v33 = vsel %vm340_vm2, %v808_v32, 0  ;;  %v126_v36 = vld [vmem:[#allocation2 + $0x8] sm:$0xff] }
   0xf   :  { %759 = vmatprep.subr.bf16.mxu0 %v824_v2  ;;  %777 = vmatprep.subr.bf16.mxu1 %v824_v2  ;;  %v125_v34 = vld [vmem:[#allocation2] sm:$0xff] }
  0x12   :  { %760 = vmatpush3.bf16.msra.mxu0 %v801_v6  ;;  %778 = vmatpush3.bf16.msra.mxu1 %v342_v33 }
  0x13   :  { %761 = vmatprep.subr.bf16.mxu0 %v824_v2  ;;  %783 = vmatprep.subr.bf16.mxu1 %v824_v2 }
  0x16   :  { %762 = vmatpush3.bf16.msra.mxu0 %v802_v7 }
  0x17   :  { %763 = vmatprep.subr.bf16.mxu0 %v824_v2 }
  0x1a   :  { %764 = vmatpush3.bf16.msra.mxu0 %v803_v8 }
  0x1b   :  { %765 = vmatprep.subr.bf16.mxu0 %v824_v2 }
  0x1e   :  { %766 = vmatpush3.bf16.msra.mxu0 %v804_v9  ;;  %v290_v9 = vlaneseq }
  0x1f   :  { %767 = vmatprep.subr.bf16.mxu0 %v824_v2 }
  0x22   :  { %768 = vmatpush3.bf16.msra.mxu0 %v805_v10  ;;  %v291_v10 = vshrl.u32 %v290_v9, 7 }
  0x23   :  { %769 = vmatprep.subr.bf16.mxu0 %v824_v2 }
  0x26   :  { %770 = vmatpush3.bf16.msra.mxu0 %v806_v11  ;;  %v252_v11 = vld [vmem:[%s1160_s25] sm:$0x1] }
  0x88   :  { %v92_v13 = vpop.permute.xlu0 %91 }
  0x89   :  { %v99_v14 = vmul.f32 %v92_v13, %v85_v12  ;;  %v1027_v12 = vsub.s32 0, %v291_v10 }
  0x8b   :  { %v101_v16 = vadd.f32 1.0, %v99_v14 }
  0x8c   :  { %v97_v17 = vpop.permute.xlu0 %96 }
  0x8d   :  { %811 = vlog2.f32 %v101_v16  ;;  %v100_v18 = vmul.f32 %v97_v17, %v86_v15  ;;  %v253_v15 = vld [vmem:[%s1161_s2] sm:$0x1] }
  0x8f   :  { %v102_v19 = vadd.f32 1.0, %v100_v18 }
  0x91   :  { %813 = vlog2.f32 %v102_v19 }
  0x97   :  { %v812_v20 = vpop.eup %811 }
  0x98   :  { %v104_v21 = vmul.f32 0.6931472, %v812_v20 }
  0x9a   :  { %v114_v24 = vmul.f32 %v714_v22, %v104_v21 }
  0x9b   :  { %v814_v23 = vpop.eup %813 }
  0x9c   :  { %v106_v25 = vmul.f32 0.6931472, %v814_v23  ;;  %v123_v28 = vadd.f32 %v715_v26, %v114_v24 }
  0x9e   :  { %v115_v27 = vmul.f32 %v714_v22, %v106_v25 }
  0xa0   :  { %v124_v29 = vadd.f32 %v715_v26, %v115_v27  ;;  %v724_v26 = vld [vmem:[%s1162_s26] ss:$0 sm:$0xff] }
  0xa2   :  { %v143_v30 = vpack.c.bf16 %v124_v29, %v123_v28  ;;  %v725_v29 = vld [vmem:[%s1125_s8] ss:$0 sm:$0xff] }
  0xa4   :  { %772 = vmatmul.mubr.bf16.vlgmr.msra.gmra.mrb[0].mxu0 %v143_v30 }
 0x177   :  { %v226_v35 = vpop.f32.mrb[0].mxu0 }
 0x178   :  { %v233_v37 = vadd.f32 %v226_v35, %v125_v34  ;;  %v773_v38 = vpop.f32.mrb[1].mxu0  ;;  %v809_v35 = vld [vmem:[%s1126_s14] sm:$0xff]  }
 0x179   :  { %v229_v39 = vpop.f32.mrb[2].mxu0 }
 0x17a   :  { %236 = vst.msk [vmem:[#allocation2] sm:$0xff] %vm82_vm1, %v233_v37  ;;  %v234_v40 = vadd.f32 %v229_v39, %v126_v36  ;;  %v774_v41 = vpop.f32.mrb[3].mxu0 }
 0x17c   :  { %237 = vst.msk [vmem:[#allocation2 + $0x8] sm:$0xff] %vm82_vm1, %v234_v40 }
 0x181   :  { %v250_v42 = vld [vmem:[#allocation2] sm:$0xff] }
 0x182   :  { %v268_v45 = vmul.f32 %v250_v42, %v250_v42  ;;  %v258_v47 = vsel %vm82_vm1, %v250_v42, 0.0 }
 0x183   :  { %v251_v43 = vld [vmem:[#allocation2 + $0x8] sm:$0xff] }
 0x184   :  { %v257_v44 = vmul.f32 0.0, %v251_v43  ;;  %v269_v46 = vmul.f32 %v251_v43, %v251_v43  ;;  %v272_v51 = vsel %vm82_vm1, %v268_v45, 0.0 }
 0x186   :  { %v259_v48 = vsel %vm82_vm1, %v257_v44, 0.0  ;;  %v271_v49 = vmul.f32 0.0, %v269_v46 }
 0x187   :  { %v260_v50 = vadd.f32 %v259_v48, %v258_v47 }
 0x188   :  { %v273_v52 = vsel %vm82_vm1, %v271_v49, 0.0 }
 0x189   :  { %v261_v53 = vrot.slane %v260_v50, 4  ;;  %v274_v54 = vadd.f32 %v273_v52, %v272_v51 }
 0x18b   :  { %v262_v55 = vadd.f32 %v261_v53, %v260_v50  ;;  %v275_v56 = vrot.slane %v274_v54, 4 }
 0x18d   :  { %v263_v57 = vrot.slane %v262_v55, 2  ;;  %v276_v58 = vadd.f32 %v275_v56, %v274_v54 }
 0x18f   :  { %v264_v59 = vadd.f32 %v263_v57, %v262_v55  ;;  %v277_v60 = vrot.slane %v276_v58, 2 }
 0x191   :  { %v265_v61 = vrot.slane %v264_v59, 1  ;;  %v278_v62 = vadd.f32 %v277_v60, %v276_v58 }
 0x193   :  { %v266_v63 = vadd.f32 %v265_v61, %v264_v59  ;;  %v279_v0 = vrot.slane %v278_v62, 1 }
 0x195   :  { %v267_v1 = vmul.f32 0.125, %v266_v63  ;;  %v280_v3 = vadd.f32 %v279_v0, %v278_v62 }
 0x197   :  { %v281_v4 = vmul.f32 0.125, %v280_v3  ;;  %v282_v5 = vmul.f32 %v267_v1, %v267_v1 }
 0x199   :  { %v283_v6 = vsub.f32 %v281_v4, %v282_v5  ;;  %v385_v5 = vld [vmem:[%s1127_s10] sm:$0x1] }
 0x19b   :  { %v284_v7 = vmax.f32 %v283_v6, 0.0 }
 0x19d   :  { %v285_v8 = vadd.f32 1e-05, %v284_v7 }
 0x19f   :  { %815 = vrsqrt.f32 %v285_v8  ;;  %v386_v8 = vld [vmem:[%s1128_s11] sm:$0x1] }
 0x1a9   :  { %v816_v13 = vpop.eup %815 }
 0x1aa   :  { %v287_v14 = vmul.f32 %v816_v13, %v252_v11 }
 0x1ac   :  { %v288_v16 = vmul.f32 %v287_v14, %v267_v1  ;;  %v293_v17 = vrot.slane %v287_v14, %v1027_v12 }
 0x1ae   :  { %v289_v18 = vsub.f32 %v253_v15, %v288_v16  ;;  %v294_v19 = vmul.f32 %v293_v17, %v250_v42  ;;  %v295_v20 = vmul.f32 %v293_v17, %v251_v43 }
 0x1b0   :  { %v300_v21 = vrot.slane %v289_v18, %v1027_v12 }
 0x1b2   :  { %v302_v22 = vadd.f32 %v300_v21, %v294_v19  ;;  %v303_v23 = vadd.f32 %v300_v21, %v295_v20  ;;  %v729_v20 = vld [vmem:[%s1129_s12] ss:$0 sm:$0xff] }
 0x1b4   :  { %v304_v24 = vmul.f32 0.2, %v302_v22  ;;  %v305_v25 = vmul.f32 0.2, %v303_v23 }
 0x1b6   :  { %v306_v27 = vmax.f32 %v302_v22, %v304_v24  ;;  %v307_v28 = vmax.f32 %v303_v23, %v305_v25  ;;  %v730_v23 = vld [vmem:[%s1130_s13] ss:$0 sm:$0xff] }
 0x1b8   :  { %v314_v30 = vmul.f32 %v724_v26, %v306_v27  ;;  %v315_v31 = vmul.f32 %v724_v26, %v307_v28 }
 0x1ba   :  { %v322_v32 = vadd.f32 %v725_v29, %v314_v30  ;;  %v323_v33 = vadd.f32 %v725_v29, %v315_v31  ;;  %v810_v29 = vld [vmem:[%s1131_s19] sm:$0xff]  }
 0x1bc   :  { %v327_v34 = vpack.c.bf16 %v323_v33, %v322_v32 }
 0x1be   :  { %780 = vmatmul.mubr.msk.bf16.vlgmr.msra.gmra.mrb[0].mxu1 %vm82_vm1, %v327_v34 }
 0x1bf   :  { %785 = vmatprep.mubr.msk.bf16.mxu1 %vm825_vm0, %v824_v2  ;;  %784 = vmatpush3.bf16.msra.mxu1 %v809_v35 }
 0x1c0   :  { %789 = vmatprep.subr.bf16.mxu1 %v824_v2 }
 0x291   :  { %v378_v36 = vpop.f32.mrb[0].mxu1 }
 0x292   :  { %v781_v37 = vpop.f32.mrb[1].mxu1  ;;  %v402_v39 = vmul.f32 %v378_v36, %v378_v36  ;;  %v392_v43 = vsel %vm391_vm3, %v378_v36, 0.0 }
 0x293   :  { %v381_v38 = vpop.f32.mrb[2].mxu1 }
 0x294   :  { %v390_v40 = vmul.f32 0.0, %v381_v38  ;;  %v403_v41 = vmul.f32 %v381_v38, %v381_v38  ;;  %v782_v42 = vpop.f32.mrb[3].mxu1  ;;  %v406_v47 = vsel %vm391_vm3, %v402_v39, 0.0 }
 0x296   :  { %v393_v44 = vsel %vm391_vm3, %v390_v40, 0.0  ;;  %v405_v45 = vmul.f32 0.0, %v403_v41 }
 0x297   :  { %v394_v46 = vadd.f32 %v393_v44, %v392_v43 }
 0x298   :  { %v407_v48 = vsel %vm391_vm3, %v405_v45, 0.0 }
 0x299   :  { %v395_v49 = vrot.slane %v394_v46, 4  ;;  %v408_v50 = vadd.f32 %v407_v48, %v406_v47 }
 0x29b   :  { %v396_v51 = vadd.f32 %v395_v49, %v394_v46  ;;  %v409_v52 = vrot.slane %v408_v50, 4 }
 0x29d   :  { %v397_v53 = vrot.slane %v396_v51, 2  ;;  %v410_v54 = vadd.f32 %v409_v52, %v408_v50 }
 0x29f   :  { %v398_v55 = vadd.f32 %v397_v53, %v396_v51  ;;  %v411_v56 = vrot.slane %v410_v54, 2 }
 0x2a1   :  { %v399_v57 = vrot.slane %v398_v55, 1  ;;  %v412_v58 = vadd.f32 %v411_v56, %v410_v54 }
 0x2a3   :  { %v400_v59 = vadd.f32 %v399_v57, %v398_v55  ;;  %v413_v60 = vrot.slane %v412_v58, 1 }
 0x2a5   :  { %v401_v61 = vmul.f32 0.125, %v400_v59  ;;  %v414_v62 = vadd.f32 %v413_v60, %v412_v58 }
 0x2a7   :  { %v415_v63 = vmul.f32 0.125, %v414_v62  ;;  %v416_v0 = vmul.f32 %v401_v61, %v401_v61 }
 0x2a9   :  { %v417_v1 = vsub.f32 %v415_v63, %v416_v0  ;;  %v512_v0 = vld [vmem:[%s1133_s16] sm:$0x1] }
 0x2ab   :  { %v418_v3 = vmax.f32 %v417_v1, 0.0 }
 0x2ad   :  { %v419_v4 = vadd.f32 1e-05, %v418_v3 }
 0x2af   :  { %817 = vrsqrt.f32 %v419_v4 }
 0x2b9   :  { %v818_v6 = vpop.eup %817 }
 0x2ba   :  { %v421_v7 = vmul.f32 %v818_v6, %v385_v5 }
 0x2bc   :  { %v422_v9 = vmul.f32 %v421_v7, %v401_v61  ;;  %v427_v10 = vrot.slane %v421_v7, %v1027_v12  ;;  %v511_v61 = vld [vmem:[%s1132_s15] sm:$0x1] }
 0x2be   :  { %v423_v11 = vsub.f32 %v386_v8, %v422_v9  ;;  %v428_v13 = vmul.f32 %v427_v10, %v378_v36  ;;  %v429_v14 = vmul.f32 %v427_v10, %v381_v38 }
 0x2c0   :  { %v434_v15 = vrot.slane %v423_v11, %v1027_v12 }
 0x2c2   :  { %v436_v16 = vadd.f32 %v434_v15, %v428_v13  ;;  %v437_v17 = vadd.f32 %v434_v15, %v429_v14  ;;  %v733_v13 = vld [vmem:[%s1134_s17] ss:$0 sm:$0xff] }
 0x2c4   :  { %v438_v18 = vmul.f32 0.2, %v436_v16  ;;  %v439_v19 = vmul.f32 0.2, %v437_v17 }
 0x2c6   :  { %v440_v21 = vmax.f32 %v436_v16, %v438_v18  ;;  %v441_v22 = vmax.f32 %v437_v17, %v439_v19  ;;  %v734_v16 = vld [vmem:[%s1135_s18] ss:$0 sm:$0xff] }
 0x2c8   :  { %v448_v24 = vmul.f32 %v729_v20, %v440_v21  ;;  %v449_v25 = vmul.f32 %v729_v20, %v441_v22 }
 0x2ca   :  { %v456_v26 = vadd.f32 %v730_v23, %v448_v24  ;;  %v457_v27 = vadd.f32 %v730_v23, %v449_v25 }
 0x2cc   :  { %v460_v28 = vpack.c.bf16 %v457_v27, %v456_v26 }
 0x2ce   :  { %786 = vmatmul.mubr.msk.bf16.vlgmr.msra.gmra.mrb[4].mxu1 %vm391_vm3, %v460_v28 }
 0x2cf   :  { %791 = vmatprep.mubr.msk.bf16.mxu1 %vm825_vm0, %v824_v2  ;;  %790 = vmatpush3.bf16.msra.mxu1 %v810_v29 }
 0x3a1   :  { %v504_v30 = vpop.f32.mrb[4].mxu1 }
 0x3a2   :  { %v787_v31 = vpop.f32.mrb[5].mxu1  ;;  %v527_v33 = vmul.f32 %v504_v30, %v504_v30  ;;  %v517_v37 = vsel %vm391_vm3, %v504_v30, 0.0 }
 0x3a3   :  { %v507_v32 = vpop.f32.mrb[6].mxu1 }
 0x3a4   :  { %v516_v34 = vmul.f32 0.0, %v507_v32  ;;  %v528_v35 = vmul.f32 %v507_v32, %v507_v32  ;;  %v788_v36 = vpop.f32.mrb[7].mxu1  ;;  %v531_v2 = vsel %vm391_vm3, %v527_v33, 0.0 }
 0x3a6   :  { %v518_v38 = vsel %vm391_vm3, %v516_v34, 0.0  ;;  %v530_v39 = vmul.f32 0.0, %v528_v35 }
 0x3a7   :  { %v519_v40 = vadd.f32 %v518_v38, %v517_v37 }
 0x3a8   :  { %v532_v41 = vsel %vm391_vm3, %v530_v39, 0.0 }
 0x3a9   :  { %v520_v42 = vrot.slane %v519_v40, 4  ;;  %v533_v43 = vadd.f32 %v532_v41, %v531_v2 }
 0x3ab   :  { %v521_v44 = vadd.f32 %v520_v42, %v519_v40  ;;  %v534_v45 = vrot.slane %v533_v43, 4 }
 0x3ad   :  { %v522_v46 = vrot.slane %v521_v44, 2  ;;  %v535_v47 = vadd.f32 %v534_v45, %v533_v43 }
 0x3af   :  { %v523_v48 = vadd.f32 %v522_v46, %v521_v44  ;;  %v536_v49 = vrot.slane %v535_v47, 2 }
 0x3b1   :  { %v524_v50 = vrot.slane %v523_v48, 1  ;;  %v537_v51 = vadd.f32 %v536_v49, %v535_v47 }
 0x3b3   :  { %v525_v52 = vadd.f32 %v524_v50, %v523_v48  ;;  %v538_v53 = vrot.slane %v537_v51, 1 }
 0x3b5   :  { %v526_v54 = vmul.f32 0.125, %v525_v52  ;;  %v539_v55 = vadd.f32 %v538_v53, %v537_v51  ;;  %v636_v53 = vld [vmem:[%s1136_s20] sm:$0x1] }
 0x3b7   :  { %v540_v56 = vmul.f32 0.125, %v539_v55  ;;  %v541_v57 = vmul.f32 %v526_v54, %v526_v54 }
 0x3b9   :  { %v542_v58 = vsub.f32 %v540_v56, %v541_v57  ;;  %v637_v56 = vld [vmem:[%s1137_s21] sm:$0x1] }
 0x3bb   :  { %v543_v59 = vmax.f32 %v542_v58, 0.0 }
 0x3bd   :  { %v544_v60 = vadd.f32 1e-05, %v543_v59 }
 0x3bf   :  { %819 = vrsqrt.f32 %v544_v60 }
 0x3c9   :  { %v820_v62 = vpop.eup %819 }
 0x3ca   :  { %v546_v63 = vmul.f32 %v820_v62, %v511_v61 }
 0x3cc   :  { %v547_v1 = vmul.f32 %v546_v63, %v526_v54  ;;  %v552_v3 = vrot.slane %v546_v63, %v1027_v12 }
 0x3ce   :  { %v548_v4 = vsub.f32 %v512_v0, %v547_v1  ;;  %v553_v5 = vmul.f32 %v552_v3, %v504_v30  ;;  %v554_v6 = vmul.f32 %v552_v3, %v507_v32 }
 0x3d0   :  { %v559_v7 = vrot.slane %v548_v4, %v1027_v12  ;;  %v737_v4 = vld [vmem:[%s1138_s22] ss:$0 sm:$0xff] }
 0x3d2   :  { %v561_v8 = vadd.f32 %v559_v7, %v553_v5  ;;  %v562_v9 = vadd.f32 %v559_v7, %v554_v6  ;;  %v738_v7 = vld [vmem:[%s1139_s23] ss:$0 sm:$0xff] }
 0x3d4   :  { %v563_v10 = vmul.f32 0.2, %v561_v8  ;;  %v564_v11 = vmul.f32 0.2, %v562_v9 }
 0x3d6   :  { %v565_v14 = vmax.f32 %v561_v8, %v563_v10  ;;  %v566_v15 = vmax.f32 %v562_v9, %v564_v11 }
 0x3d8   :  { %v573_v17 = vmul.f32 %v733_v13, %v565_v14  ;;  %v574_v18 = vmul.f32 %v733_v13, %v566_v15 }
 0x3da   :  { %v581_v19 = vadd.f32 %v734_v16, %v573_v17  ;;  %v582_v20 = vadd.f32 %v734_v16, %v574_v18 }
 0x3dc   :  { %v585_v21 = vpack.c.bf16 %v582_v20, %v581_v19 }
 0x3de   :  { %792 = vmatmul.mubr.msk.bf16.vlgmr.msra.gmra.mrb[8].mxu1 %vm391_vm3, %v585_v21 }
 0x4b1   :  { %v629_v22 = vpop.f32.mrb[8].mxu1 }
 0x4b2   :  { %v793_v23 = vpop.f32.mrb[9].mxu1  ;;  %v652_v25 = vmul.f32 %v629_v22, %v629_v22  ;;  %v642_v29 = vsel %vm82_vm1, %v629_v22, 0.0 }
 0x4b3   :  { %v632_v24 = vpop.f32.mrb[10].mxu1 }
 0x4b4   :  { %v641_v26 = vmul.f32 0.0, %v632_v24  ;;  %v653_v27 = vmul.f32 %v632_v24, %v632_v24  ;;  %v794_v28 = vpop.f32.mrb[11].mxu1  ;;  %v656_v33 = vsel %vm82_vm1, %v652_v25, 0.0 }
 0x4b6   :  { %v643_v30 = vsel %vm82_vm1, %v641_v26, 0.0  ;;  %v655_v31 = vmul.f32 0.0, %v653_v27 }
 0x4b7   :  { %v644_v32 = vadd.f32 %v643_v30, %v642_v29 }
 0x4b8   :  { %v657_v34 = vsel %vm82_vm1, %v655_v31, 0.0 }
 0x4b9   :  { %v645_v35 = vrot.slane %v644_v32, 4  ;;  %v658_v36 = vadd.f32 %v657_v34, %v656_v33 }
 0x4bb   :  { %v646_v37 = vadd.f32 %v645_v35, %v644_v32  ;;  %v659_v38 = vrot.slane %v658_v36, 4 }
 0x4bd   :  { %v647_v39 = vrot.slane %v646_v37, 2  ;;  %v660_v40 = vadd.f32 %v659_v38, %v658_v36 }
 0x4bf   :  { %v648_v2 = vadd.f32 %v647_v39, %v646_v37  ;;  %v661_v41 = vrot.slane %v660_v40, 2 }
 0x4c1   :  { %v649_v42 = vrot.slane %v648_v2, 1  ;;  %v662_v43 = vadd.f32 %v661_v41, %v660_v40 }
 0x4c3   :  { %v650_v44 = vadd.f32 %v649_v42, %v648_v2  ;;  %v663_v45 = vrot.slane %v662_v43, 1 }
 0x4c5   :  { %v651_v46 = vmul.f32 0.125, %v650_v44  ;;  %v664_v47 = vadd.f32 %v663_v45, %v662_v43 }
 0x4c7   :  { %v665_v48 = vmul.f32 0.125, %v664_v47  ;;  %v666_v49 = vmul.f32 %v651_v46, %v651_v46 }
 0x4c9   :  { %v667_v50 = vsub.f32 %v665_v48, %v666_v49 }
 0x4cb   :  { %v668_v51 = vmax.f32 %v667_v50, 0.0 }
 0x4cd   :  { %v669_v52 = vadd.f32 1e-05, %v668_v51 }
 0x4cf   :  { %821 = vrsqrt.f32 %v669_v52 }
 0x4d9   :  { %v822_v54 = vpop.eup %821 }
 0x4da   :  { %v671_v55 = vmul.f32 %v822_v54, %v636_v53 }
 0x4dc   :  { %v672_v57 = vmul.f32 %v671_v55, %v651_v46  ;;  %v677_v58 = vrot.slane %v671_v55, %v1027_v12 }
 0x4de   :  { %v673_v59 = vsub.f32 %v637_v56, %v672_v57  ;;  %v678_v60 = vmul.f32 %v677_v58, %v629_v22  ;;  %v679_v61 = vmul.f32 %v677_v58, %v632_v24 }
 0x4e0   :  { %v684_v62 = vrot.slane %v673_v59, %v1027_v12 }
 0x4e2   :  { %v686_v63 = vadd.f32 %v684_v62, %v678_v60  ;;  %v687_v0 = vadd.f32 %v684_v62, %v679_v61 }
 0x4e4   :  { %v688_v1 = vmul.f32 0.2, %v686_v63  ;;  %v689_v3 = vmul.f32 0.2, %v687_v0 }
 0x4e6   :  { %v690_v5 = vmax.f32 %v686_v63, %v688_v1  ;;  %v691_v6 = vmax.f32 %v687_v0, %v689_v3 }
 0x4e8   :  { %v698_v8 = vmul.f32 %v737_v4, %v690_v5  ;;  %v699_v9 = vmul.f32 %v737_v4, %v691_v6 }
 0x4ea   :  { %v706_v10 = vadd.f32 %v738_v7, %v698_v8  ;;  %v707_v11 = vadd.f32 %v738_v7, %v699_v9 }
 0x4ec   :  { %708 = vst.msk [vmem:[%s1140_s24] sm:$0xff] %vm82_vm1, %v706_v10  ;;  %709 = vst.msk [vmem:[%s1140_s24 + $0x8] sm:$0xff] %vm82_vm1, %v707_v11 }

// kernel: fnn_autoencoder_forward.3
= control target key start
LH: loop header
LB: loop body
LE: loop exit
PB: predicated region body
PF: predicated region fallthrough
CT: control target
= control target key end

     0   :  { %vm61_vm0 = vcmask 1043456   ;;  %v431_v0 = vmov 0.0   ;;  %vm432_vm1 = vmmov 0   ;;  %v433_v5 = vmov 0   ;;  %s604_s3 = inlined_call_operand.vmem [shape: bf16[24,128], index: 3, kind: input, shape index: {}]   ;;  %s605_s0 = inlined_call_operand.vmem [shape: f32[16,24], index: 0, kind: input, shape index: {}]   ;;  %s606_s9 = inlined_call_operand.vmem [shape: bf16[24,128], index: 9, kind: input, shape index: {}]   ;;  %s607_s6 = inlined_call_operand.vmem [shape: bf16[24,128], index: 6, kind: input, shape index: {}]   ;;  %s608_s1 = inlined_call_operand.vmem [shape: f32[16,1], index: 1, kind: input, shape index: {}]   ;;  %s609_s2 = inlined_call_operand.vmem [shape: f32[16,1], index: 2, kind: input, shape index: {}]   ;;  %s610_s4 = inlined_call_operand.vmem [shape: f32[1,128], index: 4, kind: input, shape index: {}]   ;;  %s611_s5 = inlined_call_operand.vmem [shape: f32[1,128], index: 5, kind: input, shape index: {}]   ;;  %s612_s7 = inlined_call_operand.vmem [shape: f32[1,128], index: 7, kind: input, shape index: {}]   ;;  %s613_s8 = inlined_call_operand.vmem [shape: f32[1,128], index: 8, kind: input, shape index: {}]   ;;  %s614_s10 = inlined_call_operand.vmem [shape: f32[1,128], index: 10, kind: input, shape index: {}]   ;;  %s615_s12 = inlined_call_operand.vmem [shape: f32[7,16,128], index: 12, kind: output, shape index: {}]   ;;  %s616_s11 = inlined_call_operand.vmem [shape: f32[1,128], index: 11, kind: input, shape index: {}]  }
   0x1   :  { %380 = vmatprep.subr.bf16.mxu0 %v431_v0  ;;  %v409_v1 = vld [vmem:[%s604_s3] sm:$0xff]   ;;  %384 = vmatprep.mubr.msk.bf16.mxu0 %vm432_vm1, %v431_v0  ;;  %v410_v2 = vld [vmem:[%s604_s3 + $0x8] ss:$0 sps:$4 sm:$0xff]   ;;  %vm57_vm2 = vcmask 195584  }
   0x2   :  { %v42_v3 = vld [vmem:[%s605_s0] sm:$0xff]  ;;  %388 = vmatprep.subr.bf16.mxu1 %v431_v0  ;;  %392 = vmatprep.mubr.msk.bf16.mxu1 %vm432_vm1, %v431_v0  ;;  %v43_v4 = vld [vmem:[%s605_s0 + $0x8] sm:$0xff]  ;;  %v63_v6 = vsel %vm61_vm0, %v410_v2, 0 }
   0x3   :  { %381 = vmatpush3.bf16.msra.mxu0 %v409_v1  ;;  %407 = vset.pattern.permute.xlu0 %v433_v5  ;;  %v413_v7 = vld [vmem:[%s607_s6] sm:$0xff]   ;;  %v47_v8 = vpack.c.bf16 %v43_v4, %v42_v3  ;;  %v414_v9 = vld [vmem:[%s607_s6 + $0x8] ss:$0 sps:$4 sm:$0xff]  }
   0x4   :  { %382 = vmatprep.subr.bf16.mxu0 %v431_v0  ;;  %408 = vset.pattern.permute.xlu1 %v433_v5  ;;  %v272_v10 = vld [vmem:[%s608_s1] sm:$0xff]  ;;  %v412_v13 = vld [vmem:[%s606_s9 + $0x8] ss:$0 sps:$4 sm:$0xff]   ;;  %v137_v14 = vsel %vm61_vm0, %v414_v9, 0 }
   0x5   :  { %v411_v11 = vld [vmem:[%s606_s9] sm:$0xff]   ;;  %389 = vmatpush3.bf16.msra.mxu1 %v413_v7  ;;  %282 = vperm.xlu0 %407, %v272_v10   ;;  %v273_v15 = vld [vmem:[%s608_s1 + $0x8] sm:$0xff]  ;;  %v211_v17 = vsel %vm61_vm0, %v412_v13, 0 }
   0x6   :  { %v274_v12 = vld [vmem:[%s609_s2] sm:$0xff]  ;;  %390 = vmatprep.subr.bf16.mxu1 %v431_v0  ;;  %v275_v16 = vld [vmem:[%s609_s2 + $0x8] sm:$0xff] }
   0x7   :  { %383 = vmatpush3.bf16.msra.mxu0 %v63_v6  ;;  %294 = vperm.xlu1 %408, %v274_v12   ;;  %v347_v18 = vld [vmem:[%s610_s4] ss:$0 sm:$0xff] }
   0x8   :  { %396 = vmatprep.subr.bf16.mxu0 %v431_v0  ;;  %v348_v21 = vld [vmem:[%s611_s5] ss:$0 sm:$0xff] }
   0x9   :  { %391 = vmatpush3.bf16.msra.mxu1 %v137_v14  ;;  %287 = vperm.xlu0 %407, %v273_v15   ;;  %v352_v28 = vld [vmem:[%s612_s7] ss:$0 sm:$0xff] }
   0xa   :  { %385 = vmatmul.mubr.msk.bf16.vlgmr.msra.gmra.mrb[0].mxu0 %vm57_vm2, %v47_v8  ;;  %v353_v34 = vld [vmem:[%s613_s8] ss:$0 sm:$0xff] }
   0xb   :  { %397 = vmatpush3.bf16.msra.mxu0 %v411_v11  ;;  %400 = vmatprep.mubr.msk.bf16.mxu0 %vm432_vm1, %v431_v0  ;;  %v357_v35 = vld [vmem:[%s614_s10] ss:$0 sm:$0xff] }
   0xc   :  { %398 = vmatprep.subr.bf16.mxu0 %v431_v0  ;;  %299 = vperm.xlu1 %408, %v275_v16   ;;  %v358_v42 = vld [vmem:[%s616_s11] ss:$0 sm:$0xff] }
   0xd   :  { %393 = vmatmul.mubr.msk.bf16.vlgmr.msra.gmra.mrb[0].mxu1 %vm57_vm2, %v47_v8 }
   0xf   :  { %399 = vmatpush3.bf16.msra.mxu0 %v211_v17 }
  0x12   :  { %401 = vmatmul.mubr.msk.bf16.vlgmr.msra.gmra.mrb[4].mxu0 %vm57_vm2, %v47_v8 }
  0x84   :  { %v283_v19 = vpop.permute.xlu0 %282 }
  0x86   :  { %v295_v54 = vpop.permute.xlu1 %294 }
  0x88   :  { %v288_v29 = vpop.permute.xlu0 %287 }
  0x8b   :  { %v300_v62 = vpop.permute.xlu1 %299 }
  0xdd   :  { %v99_v20 = vpop.f32.mrb[0].mxu0 }
  0xde   :  { %v113_v22 = vmul.f32 %v347_v18, %v99_v20  ;;  %v386_v23 = vpop.f32.mrb[1].mxu0 }
  0xdf   :  { %v102_v24 = vpop.f32.mrb[2].mxu0 }
  0xe0   :  { %v122_v25 = vadd.f32 %v348_v21, %v113_v22  ;;  %v114_v26 = vmul.f32 %v347_v18, %v102_v24  ;;  %v387_v27 = vpop.f32.mrb[3].mxu0  ;;  %v173_v33 = vpop.f32.mrb[0].mxu1 }
  0xe1   :  { %v187_v36 = vmul.f32 %v352_v28, %v173_v33  ;;  %v394_v37 = vpop.f32.mrb[1].mxu1 }
  0xe2   :  { %v276_v30 = vmul.f32 1.442695, %v122_v25  ;;  %v290_v31 = vadd.f32 %v283_v19, %v122_v25  ;;  %v123_v32 = vadd.f32 %v348_v21, %v114_v26  ;;  %v176_v40 = vpop.f32.mrb[2].mxu1 }
  0xe3   :  { %v196_v43 = vadd.f32 %v353_v34, %v187_v36  ;;  %v188_v44 = vmul.f32 %v352_v28, %v176_v40  ;;  %v395_v45 = vpop.f32.mrb[3].mxu1 }
  0xe4   :  { %415 = vpow2.f32 %v276_v30  ;;  %320 = vst [vmem:[%s615_s12] sm:$0xff] %v290_v31  ;;  %v278_v38 = vmul.f32 1.442695, %v123_v32  ;;  %v291_v39 = vadd.f32 %v288_v29, %v123_v32 }
  0xe5   :  { %v247_v41 = vpop.f32.mrb[4].mxu0  ;;  %v304_v49 = vmul.f32 1.442695, %v196_v43  ;;  %359 = vst [vmem:[%s615_s12 + $0x10] sm:$0xff] %v196_v43  ;;  %v197_v50 = vadd.f32 %v353_v34, %v188_v44 }
  0xe6   :  { %417 = vpow2.f32 %v278_v38  ;;  %321 = vst [vmem:[%s615_s12 + $0x8] sm:$0xff] %v291_v39  ;;  %v261_v46 = vmul.f32 %v357_v35, %v247_v41  ;;  %v402_v47 = vpop.f32.mrb[5].mxu0 }
  0xe7   :  { %v250_v48 = vpop.f32.mrb[6].mxu0  ;;  %419 = vpow2.f32 %v304_v49  ;;  %v306_v55 = vmul.f32 1.442695, %v197_v50  ;;  %360 = vst [vmem:[%s615_s12 + $0x18] sm:$0xff] %v197_v50 }
  0xe8   :  { %v270_v51 = vadd.f32 %v358_v42, %v261_v46  ;;  %v262_v52 = vmul.f32 %v357_v35, %v250_v48  ;;  %v403_v53 = vpop.f32.mrb[7].mxu0 }
  0xe9   :  { %421 = vpow2.f32 %v306_v55 }
  0xea   :  { %v308_v56 = vsub.f32 0.0, %v270_v51  ;;  %361 = vst [vmem:[%s615_s12 + $0x20] sm:$0xff] %v270_v51  ;;  %v271_v57 = vadd.f32 %v358_v42, %v262_v52 }
  0xec   :  { %v310_v58 = vmul.f32 1.442695, %v308_v56  ;;  %v309_v59 = vsub.f32 0.0, %v271_v57  ;;  %362 = vst [vmem:[%s615_s12 + $0x28] sm:$0xff] %v271_v57 }
  0xee   :  { %v416_v60 = vpop.eup %415  ;;  %423 = vpow2.f32 %v310_v58  ;;  %v312_v61 = vmul.f32 1.442695, %v309_v59 }
  0xef   :  { %369 = vst [vmem:[%s615_s12 + $0x60] sm:$0xff] %v416_v60  ;;  %v302_v63 = vmul.f32 %v416_v60, %v295_v54 }
  0xf0   :  { %v418_v0 = vpop.eup %417  ;;  %425 = vpow2.f32 %v312_v61 }
  0xf1   :  { %370 = vst [vmem:[%s615_s12 + $0x68] sm:$0xff] %v418_v0  ;;  %363 = vst [vmem:[%s615_s12 + $0x30] sm:$0xff] %v302_v63  ;;  %v303_v1 = vmul.f32 %v418_v0, %v300_v62  ;;  %v420_v2 = vpop.eup %419 }
  0xf2   :  { %365 = vst [vmem:[%s615_s12 + $0x40] sm:$0xff] %v420_v2 }
  0xf3   :  { %364 = vst [vmem:[%s615_s12 + $0x38] sm:$0xff] %v303_v1  ;;  %v422_v3 = vpop.eup %421 }
  0xf4   :  { %366 = vst [vmem:[%s615_s12 + $0x48] sm:$0xff] %v422_v3 }
  0xf8   :  { %v424_v4 = vpop.eup %423 }
  0xf9   :  { %v314_v5 = vadd.f32 1.0, %v424_v4 }
  0xfa   :  { %v426_v6 = vpop.eup %425 }
  0xfb   :  { %427 = vrcp.f32 %v314_v5  ;;  %v315_v7 = vadd.f32 1.0, %v426_v6 }
  0xfd   :  { %429 = vrcp.f32 %v315_v7 }
 0x105   :  { %v428_v8 = vpop.eup %427 }
 0x106   :  { %367 = vst [vmem:[%s615_s12 + $0x50] sm:$0xff] %v428_v8 }
 0x107   :  { %v430_v9 = vpop.eup %429 }
 0x108   :  { %368 = vst [vmem:[%s615_s12 + $0x58] sm:$0xff] %v430_v9 }

</bundles_post_ra>
